<compile_context>
chip_gen: v7x
topology: tpu7x:2x2x1
jax: 0.10.0
libtpu: 0.0.40
codegen_flags: <defaults>
</compile_context>

<pallas_src>
import functools

import jax
import jax.numpy as jnp
from jax.experimental import pallas as pl
from jax.experimental.pallas import tpu as pltpu


def _round_up(v, m):
    return (v + m - 1) // m * m


def _tpu_config():
    """Return (is_v7x, vmem_limit_bytes) with safe fallbacks."""
    kind = ""
    try:
        kind = getattr(jax.devices()[0], "device_kind", "") or ""
    except Exception:
        pass
    kind = kind.lower()
    is_v7 = ("v7" in kind) or ("7x" in kind)

    vmem_cap = None
    try:
        info = pltpu.get_tpu_info()
        vmem_cap = getattr(info, "vmem_capacity_bytes", None)
    except Exception:
        vmem_cap = None
    if not vmem_cap:
        vmem_cap = (64 if is_v7 else 128) * 1024 * 1024

    # Leave headroom for compiler-internal scratch; cap at 112 MiB (v5e/v6e),
    # ~48 MiB on v7x's 64 MiB VMEM.
    vmem_limit = min(vmem_cap - 16 * 1024 * 1024, 112 * 1024 * 1024)
    vmem_limit = max(vmem_limit, 32 * 1024 * 1024)
    return is_v7, int(vmem_limit)


def _sigmoid(x):
    # One EUP tanh instead of exp + reciprocal: shortens the serial per-step
    # chain in the EUP-bound regime.
    return 0.5 * (jnp.tanh(0.5 * x) + 1.0)


def lstm_recurrence_kernel(g_ref, whh_ref, out_ref, c_ref, *, hidden, unroll):
    """One grid step == one time chunk for one batch tile.

    g_ref   : (CHUNK, TB, Gp)  precomputed x@W_ih^T + bias (padded, maybe bf16)
    whh_ref : (H, Gp)          W_hh^T, gate axis padded (maybe bf16)
    out_ref : (TB, H)          h state; VMEM-resident across the time axis
                               (constant block index) -> final value is h_T
    c_ref   : (TB, H)          f32 VMEM scratch carried across time chunks
    """
    t_idx = pl.program_id(1)  # time-chunk axis (inner, sequential)

    @pl.when(t_idx == 0)
    def _():
        out_ref[...] = jnp.zeros_like(out_ref)
        c_ref[...] = jnp.zeros_like(c_ref)

    H = hidden
    chunk = g_ref.shape[0]
    whh = whh_ref[...]  # loaded once per chunk

    def step(i, carry):
        h, c = carry  # f32 state
        g_in = g_ref[i].astype(jnp.float32)                       # (TB, Gp)
        gates = g_in + jnp.dot(h.astype(whh.dtype), whh,
                               preferred_element_type=jnp.float32)
        i_g = _sigmoid(gates[:, 0 * H:1 * H])
        f_g = _sigmoid(gates[:, 1 * H:2 * H])
        g_g = jnp.tanh(gates[:, 2 * H:3 * H])
        o_g = _sigmoid(gates[:, 3 * H:4 * H])
        c_new = f_g * c + i_g * g_g
        h_new = o_g * jnp.tanh(c_new)
        return (h_new, c_new)

    h_fin, c_fin = jax.lax.fori_loop(0, chunk, step,
                                     (out_ref[...], c_ref[...]),
                                     unroll=unroll)
    # Correct only because the out block index is constant along the time
    # axis: the block stays VMEM-resident and HBM writeback happens once per
    # batch tile, carrying h_T.
    out_ref[...] = h_fin
    c_ref[...] = c_fin


def lstm_classifier_forward(x, params, *, time_chunk=None, batch_tile=None,
                            param_dtype=jnp.bfloat16):
    """x: (batch, seq, input_size) -> logits (batch, num_classes).

    param_dtype controls the dtype of the streamed gate tensor G and of W_hh
    fed to the MXU; h/c state and all element-wise math stay float32.
    """
    f32 = jnp.float32
    B, T, D = x.shape
    H = params["w_hh"].shape[1]          # w_hh: (4H, H)
    G4 = 4 * H
    Gp = _round_up(G4, 128)              # concatenated gate axis, lane aligned
    Bp = _round_up(B, 8)

    is_v7, vmem_limit = _tpu_config()

    # --- batch tiling: split across the two TensorCores only on v7x ---------
    if batch_tile is None:
        if is_v7 and Bp >= 16:
            batch_tile = _round_up((Bp + 1) // 2, 8)   # nb == 2
        else:
            batch_tile = Bp                            # nb == 1 (v5e/v6e)
    else:
        batch_tile = _round_up(batch_tile, 8)
    Bp = _round_up(Bp, batch_tile)
    nb = Bp // batch_tile

    g_bytes = jnp.dtype(param_dtype).itemsize
    w_bytes = g_bytes

    # --- time chunk: largest that fits the VMEM budget (g double-buffered) --
    if time_chunk is None:
        fixed = 2 * H * Gp * w_bytes + 3 * batch_tile * H * 4   # whh + out + c
        time_chunk = 1
        for cand in (32, 16, 8, 4, 2, 1):
            g_buf = 2 * cand * batch_tile * Gp * g_bytes
            if fixed + g_buf <= int(0.7 * vmem_limit):
                time_chunk = cand
                break
    chunk = max(1, min(time_chunk, T))
    nt = -(-T // chunk)                  # ceil(T / chunk)
    chunk = -(-T // nt)                  # same nt, minimal zero-padded steps
    Tp = nt * chunk
    unroll = min(chunk, 8)               # cap unroll -> bounded vreg pressure

    # ---- phase 1 (plain JAX): hoisted input projection, emitted time-major -
    w_ih = params["w_ih"].astype(param_dtype)                  # (4H, D)
    bias = params["b_ih"].astype(f32) + params["b_hh"].astype(f32)
    g = jnp.einsum("btd,gd->tbg", x.astype(param_dtype), w_ih,
                   preferred_element_type=f32) + bias           # (T, B, 4H) f32
    # FRONT-pad time with zero gates (no-op steps given zero initial state),
    # pad batch to a sublane multiple and the gate axis to a lane multiple.
    g = jnp.pad(g, ((Tp - T, 0), (0, Bp - B), (0, Gp - G4))).astype(param_dtype)

    # W_hh^T with the gate axis padded to Gp (padded columns are exactly 0).
    w_hh_t = jnp.pad(params["w_hh"].astype(f32).T,
                     ((0, 0), (0, Gp - G4))).astype(param_dtype)  # (H, Gp)

    kernel = functools.partial(lstm_recurrence_kernel, hidden=H, unroll=unroll)

    def _call(buffered_whh):
        whh_idx = lambda b, t: (0, 0)
        if buffered_whh:
            # Constant-index block is fetched once; a second buffer would be
            # pure VMEM waste (Hp*4Hp*dtype bytes).
            whh_spec = pl.BlockSpec((H, Gp), whh_idx,
                                    pipeline_mode=pl.Buffered(1))
        else:
            whh_spec = pl.BlockSpec((H, Gp), whh_idx)
        grid_spec = pltpu.PrefetchScalarGridSpec(
            num_scalar_prefetch=0,
            grid=(nb, nt),                       # batch tiles x time chunks
            in_specs=[
                pl.BlockSpec((chunk, batch_tile, Gp), lambda b, t: (t, b, 0)),
                whh_spec,
            ],
            out_specs=pl.BlockSpec((batch_tile, H), lambda b, t: (b, 0)),
            scratch_shapes=[pltpu.VMEM((batch_tile, H), jnp.float32)],  # c
        )
        return pl.pallas_call(
            kernel,
            out_shape=jax.ShapeDtypeStruct((Bp, H), jnp.float32),
            grid_spec=grid_spec,
            compiler_params=pltpu.CompilerParams(
                dimension_semantics=("parallel", "arbitrary"),
                vmem_limit_bytes=vmem_limit,
            ),
        )(g, w_hh_t)

    try:
        h_last = _call(True)
    except Exception:   # pipeline_mode / Buffered(1) unsupported -> fall back
        h_last = _call(False)

    # ---- phase 3 (plain JAX): tiny final FC on the last hidden state -------
    h_last = h_last[:B]
    return h_last @ params["w_fc"].astype(f32).T + params["b_fc"].astype(f32)


def init_params(key, input_size, hidden_size, num_classes):
    """Deterministic init mimicking PyTorch uniform(-1/sqrt(H), 1/sqrt(H))."""
    k = jax.random.split(key, 6)
    s = 1.0 / jnp.sqrt(hidden_size)
    return {
        "w_ih": jax.random.uniform(k[0], (4 * hidden_size, input_size), jnp.float32, -s, s),
        "w_hh": jax.random.uniform(k[1], (4 * hidden_size, hidden_size), jnp.float32, -s, s),
        "b_ih": jax.random.uniform(k[2], (4 * hidden_size,), jnp.float32, -s, s),
        "b_hh": jax.random.uniform(k[3], (4 * hidden_size,), jnp.float32, -s, s),
        "w_fc": jax.random.uniform(k[4], (num_classes, hidden_size), jnp.float32, -s, s),
        "b_fc": jax.random.uniform(k[5], (num_classes,), jnp.float32, -s, s),
    }


def reference_forward(x, params):
    """Pure-JAX reference matching PyTorch nn.LSTM + nn.Linear semantics."""
    B, T, D = x.shape
    H = params["w_hh"].shape[1]
    h = jnp.zeros((B, H), jnp.float32)
    c = jnp.zeros((B, H), jnp.float32)
    wih_t = params["w_ih"].T
    whh_t = params["w_hh"].T
    b = params["b_ih"] + params["b_hh"]

    def step(carry, x_t):
        h, c = carry
        gates = x_t @ wih_t + h @ whh_t + b
        i_g = jax.nn.sigmoid(gates[:, 0 * H:1 * H])
        f_g = jax.nn.sigmoid(gates[:, 1 * H:2 * H])
        g_g = jnp.tanh(gates[:, 2 * H:3 * H])
        o_g = jax.nn.sigmoid(gates[:, 3 * H:4 * H])
        c = f_g * c + i_g * g_g
        h = o_g * jnp.tanh(c)
        return (h, c), None

    (h, _), _ = jax.lax.scan(step, (h, c), jnp.transpose(x, (1, 0, 2)))
    return h @ params["w_fc"].T + params["b_fc"]


if __name__ == "__main__":
    batch, seq, input_size, hidden_size, num_classes = 2, 8, 16, 32, 4

    key = jax.random.PRNGKey(0)
    kx, kp = jax.random.split(key)
    x = jax.random.normal(kx, (batch, seq, input_size), jnp.float32)
    params = init_params(kp, input_size, hidden_size, num_classes)

    ref = reference_forward(x, params)

    # f32 path: exact-ish match to the PyTorch-style reference.
    out_f32 = lstm_classifier_forward(x, params, param_dtype=jnp.float32)
    out_f32 = jax.block_until_ready(out_f32)
    assert out_f32.shape == (batch, num_classes)
    assert jnp.allclose(out_f32, ref, atol=1e-4, rtol=1e-4), (out_f32, ref)

    # Default path: bf16 streamed gates / W_hh, f32 state math — looser tol.
    # TODO(synk): for very long sequences where bf16 gate pre-activations
    # compound error, pass param_dtype=jnp.float32 for the g stream.
    out = lstm_classifier_forward(x, params)
    out = jax.block_until_ready(out)
    assert out.shape == (batch, num_classes)
    assert jnp.allclose(out, ref, atol=5e-2, rtol=5e-2), (out, ref)

    print("KERNEL_OK")
</pallas_src>

<mosaic_0001>
module attributes {stable_mosaic.version = 11 : i64} {
  func.func @lstm_recurrence_kernel(%arg0: i32, %arg1: i32, %arg2: memref<8x8x128xf32, #tpu.memory_space<vmem>>, %arg3: memref<32x128xf32, #tpu.memory_space<vmem>>, %arg4: memref<8x32xf32, #tpu.memory_space<vmem>>, %arg5: memref<8x32xf32, #tpu.memory_space<vmem>>) attributes {dimension_semantics = [#tpu.dimension_semantics<parallel>, #tpu.dimension_semantics<arbitrary>], iteration_bounds = array<i64: 1, 1>, scalar_prefetch = 0 : i64, scratch_operands = 1 : i64, tpu.core_type = #tpu.core_type<tc>, window_params = [{transform_indices = @transform_0, window_bounds = array<i64: 8, 8, 128>}, {pipeline_mode = #tpu.pipeline_mode<synchronous>, transform_indices = @transform_1, window_bounds = array<i64: 32, 128>}, {transform_indices = @transform_2, window_bounds = array<i64: 8, 32>}]} {
    %c0_i32 = arith.constant 0 : i32
    %0 = arith.cmpi eq, %arg1, %c0_i32 : i32
    %1 = arith.extui %0 : i1 to i32
    %c0_i32_0 = arith.constant 0 : i32
    %2 = arith.cmpi ne, %1, %c0_i32_0 : i32
    scf.if %2 {
      %cst_106 = arith.constant 0.000000e+00 : f32
      %296 = vector.broadcast %cst_106 : f32 to vector<8x32xf32>
      %c0_107 = arith.constant 0 : index
      %c0_108 = arith.constant 0 : index
      %297 = vector.load %arg4[%c0_107, %c0_108] : memref<8x32xf32, #tpu.memory_space<vmem>>, vector<8x32xf32>
      tpu.vector_store %arg4[%c0_107, %c0_108], %296 {strides = array<i32>} : memref<8x32xf32, #tpu.memory_space<vmem>>, vector<8x32xf32>,
      %cst_109 = arith.constant 0.000000e+00 : f32
      %298 = vector.broadcast %cst_109 : f32 to vector<8x32xf32>
      %c0_110 = arith.constant 0 : index
      %c0_111 = arith.constant 0 : index
      %299 = vector.load %arg5[%c0_110, %c0_111] : memref<8x32xf32, #tpu.memory_space<vmem>>, vector<8x32xf32>
      tpu.vector_store %arg5[%c0_110, %c0_111], %298 {strides = array<i32>} : memref<8x32xf32, #tpu.memory_space<vmem>>, vector<8x32xf32>,
    } else {
    }
    %c0 = arith.constant 0 : index
    %c0_1 = arith.constant 0 : index
    %3 = vector.load %arg3[%c0, %c0_1] : memref<32x128xf32, #tpu.memory_space<vmem>>, vector<32x128xf32>
    %c0_2 = arith.constant 0 : index
    %c0_3 = arith.constant 0 : index
    %4 = vector.load %arg4[%c0_2, %c0_3] : memref<8x32xf32, #tpu.memory_space<vmem>>, vector<8x32xf32>
    %c0_4 = arith.constant 0 : index
    %c0_5 = arith.constant 0 : index
    %5 = vector.load %arg5[%c0_4, %c0_5] : memref<8x32xf32, #tpu.memory_space<vmem>>, vector<8x32xf32>
    %c0_i32_6 = arith.constant 0 : i32
    %6 = arith.index_cast %c0_i32_6 : i32 to index
    %c0_7 = arith.constant 0 : index
    %c0_8 = arith.constant 0 : index
    %7 = vector.load %arg2[%6, %c0_7, %c0_8] : memref<8x8x128xf32, #tpu.memory_space<vmem>>, vector<1x8x128xf32>
    %8 = vector.shape_cast %7 : vector<1x8x128xf32> to vector<8x128xf32>
    %cst = arith.constant dense<0.000000e+00> : vector<8x128xf32>
    %9 = tpu.matmul %4, %3, %cst {dimension_numbers = #tpu.dot_dimension_numbers<[1], [0], [0], [1], [0, 0, 1, 1], [], []>} : vector<8x32xf32>, vector<32x128xf32>, vector<8x128xf32> -> vector<8x128xf32>
    %10 = arith.addf %8, %9 : vector<8x128xf32>
    %11 = vector.extract_strided_slice %10 {offsets = [0, 0], sizes = [8, 32], strides = [1, 1]} : vector<8x128xf32> to vector<8x32xf32>
    %cst_9 = arith.constant 5.000000e-01 : f32
    %12 = vector.broadcast %cst_9 : f32 to vector<8x32xf32>
    %13 = arith.mulf %12, %11 : vector<8x32xf32>
    %14 = math.tanh %13 : vector<8x32xf32>
    %cst_10 = arith.constant 1.000000e+00 : f32
    %15 = vector.broadcast %cst_10 : f32 to vector<8x32xf32>
    %16 = arith.addf %14, %15 : vector<8x32xf32>
    %cst_11 = arith.constant 5.000000e-01 : f32
    %17 = vector.broadcast %cst_11 : f32 to vector<8x32xf32>
    %18 = arith.mulf %17, %16 : vector<8x32xf32>
    %19 = vector.extract_strided_slice %10 {offsets = [0, 32], sizes = [8, 32], strides = [1, 1]} : vector<8x128xf32> to vector<8x32xf32>
    %cst_12 = arith.constant 5.000000e-01 : f32
    %20 = vector.broadcast %cst_12 : f32 to vector<8x32xf32>
    %21 = arith.mulf %20, %19 : vector<8x32xf32>
    %22 = math.tanh %21 : vector<8x32xf32>
    %cst_13 = arith.constant 1.000000e+00 : f32
    %23 = vector.broadcast %cst_13 : f32 to vector<8x32xf32>
    %24 = arith.addf %22, %23 : vector<8x32xf32>
    %cst_14 = arith.constant 5.000000e-01 : f32
    %25 = vector.broadcast %cst_14 : f32 to vector<8x32xf32>
    %26 = arith.mulf %25, %24 : vector<8x32xf32>
    %27 = vector.extract_strided_slice %10 {offsets = [0, 64], sizes = [8, 32], strides = [1, 1]} : vector<8x128xf32> to vector<8x32xf32>
    %28 = math.tanh %27 : vector<8x32xf32>
    %29 = vector.extract_strided_slice %10 {offsets = [0, 96], sizes = [8, 32], strides = [1, 1]} : vector<8x128xf32> to vector<8x32xf32>
    %cst_15 = arith.constant 5.000000e-01 : f32
    %30 = vector.broadcast %cst_15 : f32 to vector<8x32xf32>
    %31 = arith.mulf %30, %29 : vector<8x32xf32>
    %32 = math.tanh %31 : vector<8x32xf32>
    %cst_16 = arith.constant 1.000000e+00 : f32
    %33 = vector.broadcast %cst_16 : f32 to vector<8x32xf32>
    %34 = arith.addf %32, %33 : vector<8x32xf32>
    %cst_17 = arith.constant 5.000000e-01 : f32
    %35 = vector.broadcast %cst_17 : f32 to vector<8x32xf32>
    %36 = arith.mulf %35, %34 : vector<8x32xf32>
    %37 = arith.mulf %26, %5 : vector<8x32xf32>
    %38 = arith.mulf %18, %28 : vector<8x32xf32>
    %39 = arith.addf %37, %38 : vector<8x32xf32>
    %40 = math.tanh %39 : vector<8x32xf32>
    %41 = arith.mulf %36, %40 : vector<8x32xf32>
    %c1_i32 = arith.constant 1 : i32
    %42 = arith.index_cast %c1_i32 : i32 to index
    %c0_18 = arith.constant 0 : index
    %c0_19 = arith.constant 0 : index
    %43 = vector.load %arg2[%42, %c0_18, %c0_19] : memref<8x8x128xf32, #tpu.memory_space<vmem>>, vector<1x8x128xf32>
    %44 = vector.shape_cast %43 : vector<1x8x128xf32> to vector<8x128xf32>
    %cst_20 = arith.constant dense<0.000000e+00> : vector<8x128xf32>
    %45 = tpu.matmul %41, %3, %cst_20 {dimension_numbers = #tpu.dot_dimension_numbers<[1], [0], [0], [1], [0, 0, 1, 1], [], []>} : vector<8x32xf32>, vector<32x128xf32>, vector<8x128xf32> -> vector<8x128xf32>
    %46 = arith.addf %44, %45 : vector<8x128xf32>
    %47 = vector.extract_strided_slice %46 {offsets = [0, 0], sizes = [8, 32], strides = [1, 1]} : vector<8x128xf32> to vector<8x32xf32>
    %cst_21 = arith.constant 5.000000e-01 : f32
    %48 = vector.broadcast %cst_21 : f32 to vector<8x32xf32>
    %49 = arith.mulf %48, %47 : vector<8x32xf32>
    %50 = math.tanh %49 : vector<8x32xf32>
    %cst_22 = arith.constant 1.000000e+00 : f32
    %51 = vector.broadcast %cst_22 : f32 to vector<8x32xf32>
    %52 = arith.addf %50, %51 : vector<8x32xf32>
    %cst_23 = arith.constant 5.000000e-01 : f32
    %53 = vector.broadcast %cst_23 : f32 to vector<8x32xf32>
    %54 = arith.mulf %53, %52 : vector<8x32xf32>
    %55 = vector.extract_strided_slice %46 {offsets = [0, 32], sizes = [8, 32], strides = [1, 1]} : vector<8x128xf32> to vector<8x32xf32>
    %cst_24 = arith.constant 5.000000e-01 : f32
    %56 = vector.broadcast %cst_24 : f32 to vector<8x32xf32>
    %57 = arith.mulf %56, %55 : vector<8x32xf32>
    %58 = math.tanh %57 : vector<8x32xf32>
    %cst_25 = arith.constant 1.000000e+00 : f32
    %59 = vector.broadcast %cst_25 : f32 to vector<8x32xf32>
    %60 = arith.addf %58, %59 : vector<8x32xf32>
    %cst_26 = arith.constant 5.000000e-01 : f32
    %61 = vector.broadcast %cst_26 : f32 to vector<8x32xf32>
    %62 = arith.mulf %61, %60 : vector<8x32xf32>
    %63 = vector.extract_strided_slice %46 {offsets = [0, 64], sizes = [8, 32], strides = [1, 1]} : vector<8x128xf32> to vector<8x32xf32>
    %64 = math.tanh %63 : vector<8x32xf32>
    %65 = vector.extract_strided_slice %46 {offsets = [0, 96], sizes = [8, 32], strides = [1, 1]} : vector<8x128xf32> to vector<8x32xf32>
    %cst_27 = arith.constant 5.000000e-01 : f32
    %66 = vector.broadcast %cst_27 : f32 to vector<8x32xf32>
    %67 = arith.mulf %66, %65 : vector<8x32xf32>
    %68 = math.tanh %67 : vector<8x32xf32>
    %cst_28 = arith.constant 1.000000e+00 : f32
    %69 = vector.broadcast %cst_28 : f32 to vector<8x32xf32>
    %70 = arith.addf %68, %69 : vector<8x32xf32>
    %cst_29 = arith.constant 5.000000e-01 : f32
    %71 = vector.broadcast %cst_29 : f32 to vector<8x32xf32>
    %72 = arith.mulf %71, %70 : vector<8x32xf32>
    %73 = arith.mulf %62, %39 : vector<8x32xf32>
    %74 = arith.mulf %54, %64 : vector<8x32xf32>
    %75 = arith.addf %73, %74 : vector<8x32xf32>
    %76 = math.tanh %75 : vector<8x32xf32>
    %77 = arith.mulf %72, %76 : vector<8x32xf32>
    %c2_i32 = arith.constant 2 : i32
    %78 = arith.index_cast %c2_i32 : i32 to index
    %c0_30 = arith.constant 0 : index
    %c0_31 = arith.constant 0 : index
    %79 = vector.load %arg2[%78, %c0_30, %c0_31] : memref<8x8x128xf32, #tpu.memory_space<vmem>>, vector<1x8x128xf32>
    %80 = vector.shape_cast %79 : vector<1x8x128xf32> to vector<8x128xf32>
    %cst_32 = arith.constant dense<0.000000e+00> : vector<8x128xf32>
    %81 = tpu.matmul %77, %3, %cst_32 {dimension_numbers = #tpu.dot_dimension_numbers<[1], [0], [0], [1], [0, 0, 1, 1], [], []>} : vector<8x32xf32>, vector<32x128xf32>, vector<8x128xf32> -> vector<8x128xf32>
    %82 = arith.addf %80, %81 : vector<8x128xf32>
    %83 = vector.extract_strided_slice %82 {offsets = [0, 0], sizes = [8, 32], strides = [1, 1]} : vector<8x128xf32> to vector<8x32xf32>
    %cst_33 = arith.constant 5.000000e-01 : f32
    %84 = vector.broadcast %cst_33 : f32 to vector<8x32xf32>
    %85 = arith.mulf %84, %83 : vector<8x32xf32>
    %86 = math.tanh %85 : vector<8x32xf32>
    %cst_34 = arith.constant 1.000000e+00 : f32
    %87 = vector.broadcast %cst_34 : f32 to vector<8x32xf32>
    %88 = arith.addf %86, %87 : vector<8x32xf32>
    %cst_35 = arith.constant 5.000000e-01 : f32
    %89 = vector.broadcast %cst_35 : f32 to vector<8x32xf32>
    %90 = arith.mulf %89, %88 : vector<8x32xf32>
    %91 = vector.extract_strided_slice %82 {offsets = [0, 32], sizes = [8, 32], strides = [1, 1]} : vector<8x128xf32> to vector<8x32xf32>
    %cst_36 = arith.constant 5.000000e-01 : f32
    %92 = vector.broadcast %cst_36 : f32 to vector<8x32xf32>
    %93 = arith.mulf %92, %91 : vector<8x32xf32>
    %94 = math.tanh %93 : vector<8x32xf32>
    %cst_37 = arith.constant 1.000000e+00 : f32
    %95 = vector.broadcast %cst_37 : f32 to vector<8x32xf32>
    %96 = arith.addf %94, %95 : vector<8x32xf32>
    %cst_38 = arith.constant 5.000000e-01 : f32
    %97 = vector.broadcast %cst_38 : f32 to vector<8x32xf32>
    %98 = arith.mulf %97, %96 : vector<8x32xf32>
    %99 = vector.extract_strided_slice %82 {offsets = [0, 64], sizes = [8, 32], strides = [1, 1]} : vector<8x128xf32> to vector<8x32xf32>
    %100 = math.tanh %99 : vector<8x32xf32>
    %101 = vector.extract_strided_slice %82 {offsets = [0, 96], sizes = [8, 32], strides = [1, 1]} : vector<8x128xf32> to vector<8x32xf32>
    %cst_39 = arith.constant 5.000000e-01 : f32
    %102 = vector.broadcast %cst_39 : f32 to vector<8x32xf32>
    %103 = arith.mulf %102, %101 : vector<8x32xf32>
    %104 = math.tanh %103 : vector<8x32xf32>
    %cst_40 = arith.constant 1.000000e+00 : f32
    %105 = vector.broadcast %cst_40 : f32 to vector<8x32xf32>
    %106 = arith.addf %104, %105 : vector<8x32xf32>
    %cst_41 = arith.constant 5.000000e-01 : f32
    %107 = vector.broadcast %cst_41 : f32 to vector<8x32xf32>
    %108 = arith.mulf %107, %106 : vector<8x32xf32>
    %109 = arith.mulf %98, %75 : vector<8x32xf32>
    %110 = arith.mulf %90, %100 : vector<8x32xf32>
    %111 = arith.addf %109, %110 : vector<8x32xf32>
    %112 = math.tanh %111 : vector<8x32xf32>
    %113 = arith.mulf %108, %112 : vector<8x32xf32>
    %c3_i32 = arith.constant 3 : i32
    %114 = arith.index_cast %c3_i32 : i32 to index
    %c0_42 = arith.constant 0 : index
    %c0_43 = arith.constant 0 : index
    %115 = vector.load %arg2[%114, %c0_42, %c0_43] : memref<8x8x128xf32, #tpu.memory_space<vmem>>, vector<1x8x128xf32>
    %116 = vector.shape_cast %115 : vector<1x8x128xf32> to vector<8x128xf32>
    %cst_44 = arith.constant dense<0.000000e+00> : vector<8x128xf32>
    %117 = tpu.matmul %113, %3, %cst_44 {dimension_numbers = #tpu.dot_dimension_numbers<[1], [0], [0], [1], [0, 0, 1, 1], [], []>} : vector<8x32xf32>, vector<32x128xf32>, vector<8x128xf32> -> vector<8x128xf32>
    %118 = arith.addf %116, %117 : vector<8x128xf32>
    %119 = vector.extract_strided_slice %118 {offsets = [0, 0], sizes = [8, 32], strides = [1, 1]} : vector<8x128xf32> to vector<8x32xf32>
    %cst_45 = arith.constant 5.000000e-01 : f32
    %120 = vector.broadcast %cst_45 : f32 to vector<8x32xf32>
    %121 = arith.mulf %120, %119 : vector<8x32xf32>
    %122 = math.tanh %121 : vector<8x32xf32>
    %cst_46 = arith.constant 1.000000e+00 : f32
    %123 = vector.broadcast %cst_46 : f32 to vector<8x32xf32>
    %124 = arith.addf %122, %123 : vector<8x32xf32>
    %cst_47 = arith.constant 5.000000e-01 : f32
    %125 = vector.broadcast %cst_47 : f32 to vector<8x32xf32>
    %126 = arith.mulf %125, %124 : vector<8x32xf32>
    %127 = vector.extract_strided_slice %118 {offsets = [0, 32], sizes = [8, 32], strides = [1, 1]} : vector<8x128xf32> to vector<8x32xf32>
    %cst_48 = arith.constant 5.000000e-01 : f32
    %128 = vector.broadcast %cst_48 : f32 to vector<8x32xf32>
    %129 = arith.mulf %128, %127 : vector<8x32xf32>
    %130 = math.tanh %129 : vector<8x32xf32>
    %cst_49 = arith.constant 1.000000e+00 : f32
    %131 = vector.broadcast %cst_49 : f32 to vector<8x32xf32>
    %132 = arith.addf %130, %131 : vector<8x32xf32>
    %cst_50 = arith.constant 5.000000e-01 : f32
    %133 = vector.broadcast %cst_50 : f32 to vector<8x32xf32>
    %134 = arith.mulf %133, %132 : vector<8x32xf32>
    %135 = vector.extract_strided_slice %118 {offsets = [0, 64], sizes = [8, 32], strides = [1, 1]} : vector<8x128xf32> to vector<8x32xf32>
    %136 = math.tanh %135 : vector<8x32xf32>
    %137 = vector.extract_strided_slice %118 {offsets = [0, 96], sizes = [8, 32], strides = [1, 1]} : vector<8x128xf32> to vector<8x32xf32>
    %cst_51 = arith.constant 5.000000e-01 : f32
    %138 = vector.broadcast %cst_51 : f32 to vector<8x32xf32>
    %139 = arith.mulf %138, %137 : vector<8x32xf32>
    %140 = math.tanh %139 : vector<8x32xf32>
    %cst_52 = arith.constant 1.000000e+00 : f32
    %141 = vector.broadcast %cst_52 : f32 to vector<8x32xf32>
    %142 = arith.addf %140, %141 : vector<8x32xf32>
    %cst_53 = arith.constant 5.000000e-01 : f32
    %143 = vector.broadcast %cst_53 : f32 to vector<8x32xf32>
    %144 = arith.mulf %143, %142 : vector<8x32xf32>
    %145 = arith.mulf %134, %111 : vector<8x32xf32>
    %146 = arith.mulf %126, %136 : vector<8x32xf32>
    %147 = arith.addf %145, %146 : vector<8x32xf32>
    %148 = math.tanh %147 : vector<8x32xf32>
    %149 = arith.mulf %144, %148 : vector<8x32xf32>
    %c4_i32 = arith.constant 4 : i32
    %150 = arith.index_cast %c4_i32 : i32 to index
    %c0_54 = arith.constant 0 : index
    %c0_55 = arith.constant 0 : index
    %151 = vector.load %arg2[%150, %c0_54, %c0_55] : memref<8x8x128xf32, #tpu.memory_space<vmem>>, vector<1x8x128xf32>
    %152 = vector.shape_cast %151 : vector<1x8x128xf32> to vector<8x128xf32>
    %cst_56 = arith.constant dense<0.000000e+00> : vector<8x128xf32>
    %153 = tpu.matmul %149, %3, %cst_56 {dimension_numbers = #tpu.dot_dimension_numbers<[1], [0], [0], [1], [0, 0, 1, 1], [], []>} : vector<8x32xf32>, vector<32x128xf32>, vector<8x128xf32> -> vector<8x128xf32>
    %154 = arith.addf %152, %153 : vector<8x128xf32>
    %155 = vector.extract_strided_slice %154 {offsets = [0, 0], sizes = [8, 32], strides = [1, 1]} : vector<8x128xf32> to vector<8x32xf32>
    %cst_57 = arith.constant 5.000000e-01 : f32
    %156 = vector.broadcast %cst_57 : f32 to vector<8x32xf32>
    %157 = arith.mulf %156, %155 : vector<8x32xf32>
    %158 = math.tanh %157 : vector<8x32xf32>
    %cst_58 = arith.constant 1.000000e+00 : f32
    %159 = vector.broadcast %cst_58 : f32 to vector<8x32xf32>
    %160 = arith.addf %158, %159 : vector<8x32xf32>
    %cst_59 = arith.constant 5.000000e-01 : f32
    %161 = vector.broadcast %cst_59 : f32 to vector<8x32xf32>
    %162 = arith.mulf %161, %160 : vector<8x32xf32>
    %163 = vector.extract_strided_slice %154 {offsets = [0, 32], sizes = [8, 32], strides = [1, 1]} : vector<8x128xf32> to vector<8x32xf32>
    %cst_60 = arith.constant 5.000000e-01 : f32
    %164 = vector.broadcast %cst_60 : f32 to vector<8x32xf32>
    %165 = arith.mulf %164, %163 : vector<8x32xf32>
    %166 = math.tanh %165 : vector<8x32xf32>
    %cst_61 = arith.constant 1.000000e+00 : f32
    %167 = vector.broadcast %cst_61 : f32 to vector<8x32xf32>
    %168 = arith.addf %166, %167 : vector<8x32xf32>
    %cst_62 = arith.constant 5.000000e-01 : f32
    %169 = vector.broadcast %cst_62 : f32 to vector<8x32xf32>
    %170 = arith.mulf %169, %168 : vector<8x32xf32>
    %171 = vector.extract_strided_slice %154 {offsets = [0, 64], sizes = [8, 32], strides = [1, 1]} : vector<8x128xf32> to vector<8x32xf32>
    %172 = math.tanh %171 : vector<8x32xf32>
    %173 = vector.extract_strided_slice %154 {offsets = [0, 96], sizes = [8, 32], strides = [1, 1]} : vector<8x128xf32> to vector<8x32xf32>
    %cst_63 = arith.constant 5.000000e-01 : f32
    %174 = vector.broadcast %cst_63 : f32 to vector<8x32xf32>
    %175 = arith.mulf %174, %173 : vector<8x32xf32>
    %176 = math.tanh %175 : vector<8x32xf32>
    %cst_64 = arith.constant 1.000000e+00 : f32
    %177 = vector.broadcast %cst_64 : f32 to vector<8x32xf32>
    %178 = arith.addf %176, %177 : vector<8x32xf32>
    %cst_65 = arith.constant 5.000000e-01 : f32
    %179 = vector.broadcast %cst_65 : f32 to vector<8x32xf32>
    %180 = arith.mulf %179, %178 : vector<8x32xf32>
    %181 = arith.mulf %170, %147 : vector<8x32xf32>
    %182 = arith.mulf %162, %172 : vector<8x32xf32>
    %183 = arith.addf %181, %182 : vector<8x32xf32>
    %184 = math.tanh %183 : vector<8x32xf32>
    %185 = arith.mulf %180, %184 : vector<8x32xf32>
    %c5_i32 = arith.constant 5 : i32
    %186 = arith.index_cast %c5_i32 : i32 to index
    %c0_66 = arith.constant 0 : index
    %c0_67 = arith.constant 0 : index
    %187 = vector.load %arg2[%186, %c0_66, %c0_67] : memref<8x8x128xf32, #tpu.memory_space<vmem>>, vector<1x8x128xf32>
    %188 = vector.shape_cast %187 : vector<1x8x128xf32> to vector<8x128xf32>
    %cst_68 = arith.constant dense<0.000000e+00> : vector<8x128xf32>
    %189 = tpu.matmul %185, %3, %cst_68 {dimension_numbers = #tpu.dot_dimension_numbers<[1], [0], [0], [1], [0, 0, 1, 1], [], []>} : vector<8x32xf32>, vector<32x128xf32>, vector<8x128xf32> -> vector<8x128xf32>
    %190 = arith.addf %188, %189 : vector<8x128xf32>
    %191 = vector.extract_strided_slice %190 {offsets = [0, 0], sizes = [8, 32], strides = [1, 1]} : vector<8x128xf32> to vector<8x32xf32>
    %cst_69 = arith.constant 5.000000e-01 : f32
    %192 = vector.broadcast %cst_69 : f32 to vector<8x32xf32>
    %193 = arith.mulf %192, %191 : vector<8x32xf32>
    %194 = math.tanh %193 : vector<8x32xf32>
    %cst_70 = arith.constant 1.000000e+00 : f32
    %195 = vector.broadcast %cst_70 : f32 to vector<8x32xf32>
    %196 = arith.addf %194, %195 : vector<8x32xf32>
    %cst_71 = arith.constant 5.000000e-01 : f32
    %197 = vector.broadcast %cst_71 : f32 to vector<8x32xf32>
    %198 = arith.mulf %197, %196 : vector<8x32xf32>
    %199 = vector.extract_strided_slice %190 {offsets = [0, 32], sizes = [8, 32], strides = [1, 1]} : vector<8x128xf32> to vector<8x32xf32>
    %cst_72 = arith.constant 5.000000e-01 : f32
    %200 = vector.broadcast %cst_72 : f32 to vector<8x32xf32>
    %201 = arith.mulf %200, %199 : vector<8x32xf32>
    %202 = math.tanh %201 : vector<8x32xf32>
    %cst_73 = arith.constant 1.000000e+00 : f32
    %203 = vector.broadcast %cst_73 : f32 to vector<8x32xf32>
    %204 = arith.addf %202, %203 : vector<8x32xf32>
    %cst_74 = arith.constant 5.000000e-01 : f32
    %205 = vector.broadcast %cst_74 : f32 to vector<8x32xf32>
    %206 = arith.mulf %205, %204 : vector<8x32xf32>
    %207 = vector.extract_strided_slice %190 {offsets = [0, 64], sizes = [8, 32], strides = [1, 1]} : vector<8x128xf32> to vector<8x32xf32>
    %208 = math.tanh %207 : vector<8x32xf32>
    %209 = vector.extract_strided_slice %190 {offsets = [0, 96], sizes = [8, 32], strides = [1, 1]} : vector<8x128xf32> to vector<8x32xf32>
    %cst_75 = arith.constant 5.000000e-01 : f32
    %210 = vector.broadcast %cst_75 : f32 to vector<8x32xf32>
    %211 = arith.mulf %210, %209 : vector<8x32xf32>
    %212 = math.tanh %211 : vector<8x32xf32>
    %cst_76 = arith.constant 1.000000e+00 : f32
    %213 = vector.broadcast %cst_76 : f32 to vector<8x32xf32>
    %214 = arith.addf %212, %213 : vector<8x32xf32>
    %cst_77 = arith.constant 5.000000e-01 : f32
    %215 = vector.broadcast %cst_77 : f32 to vector<8x32xf32>
    %216 = arith.mulf %215, %214 : vector<8x32xf32>
    %217 = arith.mulf %206, %183 : vector<8x32xf32>
    %218 = arith.mulf %198, %208 : vector<8x32xf32>
    %219 = arith.addf %217, %218 : vector<8x32xf32>
    %220 = math.tanh %219 : vector<8x32xf32>
    %221 = arith.mulf %216, %220 : vector<8x32xf32>
    %c6_i32 = arith.constant 6 : i32
    %222 = arith.index_cast %c6_i32 : i32 to index
    %c0_78 = arith.constant 0 : index
    %c0_79 = arith.constant 0 : index
    %223 = vector.load %arg2[%222, %c0_78, %c0_79] : memref<8x8x128xf32, #tpu.memory_space<vmem>>, vector<1x8x128xf32>
    %224 = vector.shape_cast %223 : vector<1x8x128xf32> to vector<8x128xf32>
    %cst_80 = arith.constant dense<0.000000e+00> : vector<8x128xf32>
    %225 = tpu.matmul %221, %3, %cst_80 {dimension_numbers = #tpu.dot_dimension_numbers<[1], [0], [0], [1], [0, 0, 1, 1], [], []>} : vector<8x32xf32>, vector<32x128xf32>, vector<8x128xf32> -> vector<8x128xf32>
    %226 = arith.addf %224, %225 : vector<8x128xf32>
    %227 = vector.extract_strided_slice %226 {offsets = [0, 0], sizes = [8, 32], strides = [1, 1]} : vector<8x128xf32> to vector<8x32xf32>
    %cst_81 = arith.constant 5.000000e-01 : f32
    %228 = vector.broadcast %cst_81 : f32 to vector<8x32xf32>
    %229 = arith.mulf %228, %227 : vector<8x32xf32>
    %230 = math.tanh %229 : vector<8x32xf32>
    %cst_82 = arith.constant 1.000000e+00 : f32
    %231 = vector.broadcast %cst_82 : f32 to vector<8x32xf32>
    %232 = arith.addf %230, %231 : vector<8x32xf32>
    %cst_83 = arith.constant 5.000000e-01 : f32
    %233 = vector.broadcast %cst_83 : f32 to vector<8x32xf32>
    %234 = arith.mulf %233, %232 : vector<8x32xf32>
    %235 = vector.extract_strided_slice %226 {offsets = [0, 32], sizes = [8, 32], strides = [1, 1]} : vector<8x128xf32> to vector<8x32xf32>
    %cst_84 = arith.constant 5.000000e-01 : f32
    %236 = vector.broadcast %cst_84 : f32 to vector<8x32xf32>
    %237 = arith.mulf %236, %235 : vector<8x32xf32>
    %238 = math.tanh %237 : vector<8x32xf32>
    %cst_85 = arith.constant 1.000000e+00 : f32
    %239 = vector.broadcast %cst_85 : f32 to vector<8x32xf32>
    %240 = arith.addf %238, %239 : vector<8x32xf32>
    %cst_86 = arith.constant 5.000000e-01 : f32
    %241 = vector.broadcast %cst_86 : f32 to vector<8x32xf32>
    %242 = arith.mulf %241, %240 : vector<8x32xf32>
    %243 = vector.extract_strided_slice %226 {offsets = [0, 64], sizes = [8, 32], strides = [1, 1]} : vector<8x128xf32> to vector<8x32xf32>
    %244 = math.tanh %243 : vector<8x32xf32>
    %245 = vector.extract_strided_slice %226 {offsets = [0, 96], sizes = [8, 32], strides = [1, 1]} : vector<8x128xf32> to vector<8x32xf32>
    %cst_87 = arith.constant 5.000000e-01 : f32
    %246 = vector.broadcast %cst_87 : f32 to vector<8x32xf32>
    %247 = arith.mulf %246, %245 : vector<8x32xf32>
    %248 = math.tanh %247 : vector<8x32xf32>
    %cst_88 = arith.constant 1.000000e+00 : f32
    %249 = vector.broadcast %cst_88 : f32 to vector<8x32xf32>
    %250 = arith.addf %248, %249 : vector<8x32xf32>
    %cst_89 = arith.constant 5.000000e-01 : f32
    %251 = vector.broadcast %cst_89 : f32 to vector<8x32xf32>
    %252 = arith.mulf %251, %250 : vector<8x32xf32>
    %253 = arith.mulf %242, %219 : vector<8x32xf32>
    %254 = arith.mulf %234, %244 : vector<8x32xf32>
    %255 = arith.addf %253, %254 : vector<8x32xf32>
    %256 = math.tanh %255 : vector<8x32xf32>
    %257 = arith.mulf %252, %256 : vector<8x32xf32>
    %c7_i32 = arith.constant 7 : i32
    %258 = arith.index_cast %c7_i32 : i32 to index
    %c0_90 = arith.constant 0 : index
    %c0_91 = arith.constant 0 : index
    %259 = vector.load %arg2[%258, %c0_90, %c0_91] : memref<8x8x128xf32, #tpu.memory_space<vmem>>, vector<1x8x128xf32>
    %260 = vector.shape_cast %259 : vector<1x8x128xf32> to vector<8x128xf32>
    %cst_92 = arith.constant dense<0.000000e+00> : vector<8x128xf32>
    %261 = tpu.matmul %257, %3, %cst_92 {dimension_numbers = #tpu.dot_dimension_numbers<[1], [0], [0], [1], [0, 0, 1, 1], [], []>} : vector<8x32xf32>, vector<32x128xf32>, vector<8x128xf32> -> vector<8x128xf32>
    %262 = arith.addf %260, %261 : vector<8x128xf32>
    %263 = vector.extract_strided_slice %262 {offsets = [0, 0], sizes = [8, 32], strides = [1, 1]} : vector<8x128xf32> to vector<8x32xf32>
    %cst_93 = arith.constant 5.000000e-01 : f32
    %264 = vector.broadcast %cst_93 : f32 to vector<8x32xf32>
    %265 = arith.mulf %264, %263 : vector<8x32xf32>
    %266 = math.tanh %265 : vector<8x32xf32>
    %cst_94 = arith.constant 1.000000e+00 : f32
    %267 = vector.broadcast %cst_94 : f32 to vector<8x32xf32>
    %268 = arith.addf %266, %267 : vector<8x32xf32>
    %cst_95 = arith.constant 5.000000e-01 : f32
    %269 = vector.broadcast %cst_95 : f32 to vector<8x32xf32>
    %270 = arith.mulf %269, %268 : vector<8x32xf32>
    %271 = vector.extract_strided_slice %262 {offsets = [0, 32], sizes = [8, 32], strides = [1, 1]} : vector<8x128xf32> to vector<8x32xf32>
    %cst_96 = arith.constant 5.000000e-01 : f32
    %272 = vector.broadcast %cst_96 : f32 to vector<8x32xf32>
    %273 = arith.mulf %272, %271 : vector<8x32xf32>
    %274 = math.tanh %273 : vector<8x32xf32>
    %cst_97 = arith.constant 1.000000e+00 : f32
    %275 = vector.broadcast %cst_97 : f32 to vector<8x32xf32>
    %276 = arith.addf %274, %275 : vector<8x32xf32>
    %cst_98 = arith.constant 5.000000e-01 : f32
    %277 = vector.broadcast %cst_98 : f32 to vector<8x32xf32>
    %278 = arith.mulf %277, %276 : vector<8x32xf32>
    %279 = vector.extract_strided_slice %262 {offsets = [0, 64], sizes = [8, 32], strides = [1, 1]} : vector<8x128xf32> to vector<8x32xf32>
    %280 = math.tanh %279 : vector<8x32xf32>
    %281 = vector.extract_strided_slice %262 {offsets = [0, 96], sizes = [8, 32], strides = [1, 1]} : vector<8x128xf32> to vector<8x32xf32>
    %cst_99 = arith.constant 5.000000e-01 : f32
    %282 = vector.broadcast %cst_99 : f32 to vector<8x32xf32>
    %283 = arith.mulf %282, %281 : vector<8x32xf32>
    %284 = math.tanh %283 : vector<8x32xf32>
    %cst_100 = arith.constant 1.000000e+00 : f32
    %285 = vector.broadcast %cst_100 : f32 to vector<8x32xf32>
    %286 = arith.addf %284, %285 : vector<8x32xf32>
    %cst_101 = arith.constant 5.000000e-01 : f32
    %287 = vector.broadcast %cst_101 : f32 to vector<8x32xf32>
    %288 = arith.mulf %287, %286 : vector<8x32xf32>
    %289 = arith.mulf %278, %255 : vector<8x32xf32>
    %290 = arith.mulf %270, %280 : vector<8x32xf32>
    %291 = arith.addf %289, %290 : vector<8x32xf32>
    %292 = math.tanh %291 : vector<8x32xf32>
    %293 = arith.mulf %288, %292 : vector<8x32xf32>
    %c8_i32 = arith.constant 8 : i32
    %c0_102 = arith.constant 0 : index
    %c0_103 = arith.constant 0 : index
    %294 = vector.load %arg4[%c0_102, %c0_103] : memref<8x32xf32, #tpu.memory_space<vmem>>, vector<8x32xf32>
    tpu.vector_store %arg4[%c0_102, %c0_103], %293 {strides = array<i32>} : memref<8x32xf32, #tpu.memory_space<vmem>>, vector<8x32xf32>,
    %c0_104 = arith.constant 0 : index
    %c0_105 = arith.constant 0 : index
    %295 = vector.load %arg5[%c0_104, %c0_105] : memref<8x32xf32, #tpu.memory_space<vmem>>, vector<8x32xf32>
    tpu.vector_store %arg5[%c0_104, %c0_105], %291 {strides = array<i32>} : memref<8x32xf32, #tpu.memory_space<vmem>>, vector<8x32xf32>,
    return
  }
  func.func @transform_0(%arg0: i32, %arg1: i32) -> (i32, i32, i32) {
    %c0_i32 = arith.constant 0 : i32
    %c0_i32_0 = arith.constant 0 : i32
    return %arg1, %arg0, %c0_i32 : i32, i32, i32
  }
  func.func @transform_1(%arg0: i32, %arg1: i32) -> (i32, i32) {
    %c0_i32 = arith.constant 0 : i32
    %c0_i32_0 = arith.constant 0 : i32
    %c0_i32_1 = arith.constant 0 : i32
    return %c0_i32, %c0_i32_0 : i32, i32
  }
  func.func @transform_2(%arg0: i32, %arg1: i32) -> (i32, i32) {
    %c0_i32 = arith.constant 0 : i32
    %c0_i32_0 = arith.constant 0 : i32
    return %arg0, %c0_i32 : i32, i32
  }
}

module attributes {stable_mosaic.version = 11 : i64} {
  func.func @lstm_recurrence_kernel(%arg0: i32, %arg1: i32, %arg2: memref<8x8x128xf32, #tpu.memory_space<vmem>>, %arg3: memref<32x128xf32, #tpu.memory_space<vmem>>, %arg4: memref<8x32xf32, #tpu.memory_space<vmem>>, %arg5: memref<8x32xf32, #tpu.memory_space<vmem>>) attributes {dimension_semantics = [#tpu.dimension_semantics<parallel>, #tpu.dimension_semantics<arbitrary>], iteration_bounds = array<i64: 1, 1>, scalar_prefetch = 0 : i64, scratch_operands = 1 : i64, tpu.core_type = #tpu.core_type<tc>, window_params = [{transform_indices = @transform_0, window_bounds = array<i64: 8, 8, 128>}, {pipeline_mode = #tpu.pipeline_mode<synchronous>, transform_indices = @transform_1, window_bounds = array<i64: 32, 128>}, {transform_indices = @transform_2, window_bounds = array<i64: 8, 32>}]} {
    %c0_i32 = arith.constant 0 : i32
    %0 = arith.cmpi eq, %arg1, %c0_i32 : i32
    %1 = arith.extui %0 : i1 to i32
    %c0_i32_0 = arith.constant 0 : i32
    %2 = arith.cmpi ne, %1, %c0_i32_0 : i32
    scf.if %2 {
      %cst_106 = arith.constant 0.000000e+00 : f32
      %296 = vector.broadcast %cst_106 : f32 to vector<8x32xf32>
      %c0_107 = arith.constant 0 : index
      %c0_108 = arith.constant 0 : index
      %297 = vector.load %arg4[%c0_107, %c0_108] : memref<8x32xf32, #tpu.memory_space<vmem>>, vector<8x32xf32>
      tpu.vector_store %arg4[%c0_107, %c0_108], %296 {strides = array<i32>} : memref<8x32xf32, #tpu.memory_space<vmem>>, vector<8x32xf32>,
      %cst_109 = arith.constant 0.000000e+00 : f32
      %298 = vector.broadcast %cst_109 : f32 to vector<8x32xf32>
      %c0_110 = arith.constant 0 : index
      %c0_111 = arith.constant 0 : index
      %299 = vector.load %arg5[%c0_110, %c0_111] : memref<8x32xf32, #tpu.memory_space<vmem>>, vector<8x32xf32>
      tpu.vector_store %arg5[%c0_110, %c0_111], %298 {strides = array<i32>} : memref<8x32xf32, #tpu.memory_space<vmem>>, vector<8x32xf32>,
    } else {
    }
    %c0 = arith.constant 0 : index
    %c0_1 = arith.constant 0 : index
    %3 = vector.load %arg3[%c0, %c0_1] : memref<32x128xf32, #tpu.memory_space<vmem>>, vector<32x128xf32>
    %c0_2 = arith.constant 0 : index
    %c0_3 = arith.constant 0 : index
    %4 = vector.load %arg4[%c0_2, %c0_3] : memref<8x32xf32, #tpu.memory_space<vmem>>, vector<8x32xf32>
    %c0_4 = arith.constant 0 : index
    %c0_5 = arith.constant 0 : index
    %5 = vector.load %arg5[%c0_4, %c0_5] : memref<8x32xf32, #tpu.memory_space<vmem>>, vector<8x32xf32>
    %c0_i32_6 = arith.constant 0 : i32
    %6 = arith.index_cast %c0_i32_6 : i32 to index
    %c0_7 = arith.constant 0 : index
    %c0_8 = arith.constant 0 : index
    %7 = vector.load %arg2[%6, %c0_7, %c0_8] : memref<8x8x128xf32, #tpu.memory_space<vmem>>, vector<1x8x128xf32>
    %8 = vector.shape_cast %7 : vector<1x8x128xf32> to vector<8x128xf32>
    %cst = arith.constant dense<0.000000e+00> : vector<8x128xf32>
    %9 = tpu.matmul %4, %3, %cst {dimension_numbers = #tpu.dot_dimension_numbers<[1], [0], [0], [1], [0, 0, 1, 1], [], []>} : vector<8x32xf32>, vector<32x128xf32>, vector<8x128xf32> -> vector<8x128xf32>
    %10 = arith.addf %8, %9 : vector<8x128xf32>
    %11 = vector.extract_strided_slice %10 {offsets = [0, 0], sizes = [8, 32], strides = [1, 1]} : vector<8x128xf32> to vector<8x32xf32>
    %cst_9 = arith.constant 5.000000e-01 : f32
    %12 = vector.broadcast %cst_9 : f32 to vector<8x32xf32>
    %13 = arith.mulf %12, %11 : vector<8x32xf32>
    %14 = math.tanh %13 : vector<8x32xf32>
    %cst_10 = arith.constant 1.000000e+00 : f32
    %15 = vector.broadcast %cst_10 : f32 to vector<8x32xf32>
    %16 = arith.addf %14, %15 : vector<8x32xf32>
    %cst_11 = arith.constant 5.000000e-01 : f32
    %17 = vector.broadcast %cst_11 : f32 to vector<8x32xf32>
    %18 = arith.mulf %17, %16 : vector<8x32xf32>
    %19 = vector.extract_strided_slice %10 {offsets = [0, 32], sizes = [8, 32], strides = [1, 1]} : vector<8x128xf32> to vector<8x32xf32>
    %cst_12 = arith.constant 5.000000e-01 : f32
    %20 = vector.broadcast %cst_12 : f32 to vector<8x32xf32>
    %21 = arith.mulf %20, %19 : vector<8x32xf32>
    %22 = math.tanh %21 : vector<8x32xf32>
    %cst_13 = arith.constant 1.000000e+00 : f32
    %23 = vector.broadcast %cst_13 : f32 to vector<8x32xf32>
    %24 = arith.addf %22, %23 : vector<8x32xf32>
    %cst_14 = arith.constant 5.000000e-01 : f32
    %25 = vector.broadcast %cst_14 : f32 to vector<8x32xf32>
    %26 = arith.mulf %25, %24 : vector<8x32xf32>
    %27 = vector.extract_strided_slice %10 {offsets = [0, 64], sizes = [8, 32], strides = [1, 1]} : vector<8x128xf32> to vector<8x32xf32>
    %28 = math.tanh %27 : vector<8x32xf32>
    %29 = vector.extract_strided_slice %10 {offsets = [0, 96], sizes = [8, 32], strides = [1, 1]} : vector<8x128xf32> to vector<8x32xf32>
    %cst_15 = arith.constant 5.000000e-01 : f32
    %30 = vector.broadcast %cst_15 : f32 to vector<8x32xf32>
    %31 = arith.mulf %30, %29 : vector<8x32xf32>
    %32 = math.tanh %31 : vector<8x32xf32>
    %cst_16 = arith.constant 1.000000e+00 : f32
    %33 = vector.broadcast %cst_16 : f32 to vector<8x32xf32>
    %34 = arith.addf %32, %33 : vector<8x32xf32>
    %cst_17 = arith.constant 5.000000e-01 : f32
    %35 = vector.broadcast %cst_17 : f32 to vector<8x32xf32>
    %36 = arith.mulf %35, %34 : vector<8x32xf32>
    %37 = arith.mulf %26, %5 : vector<8x32xf32>
    %38 = arith.mulf %18, %28 : vector<8x32xf32>
    %39 = arith.addf %37, %38 : vector<8x32xf32>
    %40 = math.tanh %39 : vector<8x32xf32>
    %41 = arith.mulf %36, %40 : vector<8x32xf32>
    %c1_i32 = arith.constant 1 : i32
    %42 = arith.index_cast %c1_i32 : i32 to index
    %c0_18 = arith.constant 0 : index
    %c0_19 = arith.constant 0 : index
    %43 = vector.load %arg2[%42, %c0_18, %c0_19] : memref<8x8x128xf32, #tpu.memory_space<vmem>>, vector<1x8x128xf32>
    %44 = vector.shape_cast %43 : vector<1x8x128xf32> to vector<8x128xf32>
    %cst_20 = arith.constant dense<0.000000e+00> : vector<8x128xf32>
    %45 = tpu.matmul %41, %3, %cst_20 {dimension_numbers = #tpu.dot_dimension_numbers<[1], [0], [0], [1], [0, 0, 1, 1], [], []>} : vector<8x32xf32>, vector<32x128xf32>, vector<8x128xf32> -> vector<8x128xf32>
    %46 = arith.addf %44, %45 : vector<8x128xf32>
    %47 = vector.extract_strided_slice %46 {offsets = [0, 0], sizes = [8, 32], strides = [1, 1]} : vector<8x128xf32> to vector<8x32xf32>
    %cst_21 = arith.constant 5.000000e-01 : f32
    %48 = vector.broadcast %cst_21 : f32 to vector<8x32xf32>
    %49 = arith.mulf %48, %47 : vector<8x32xf32>
    %50 = math.tanh %49 : vector<8x32xf32>
    %cst_22 = arith.constant 1.000000e+00 : f32
    %51 = vector.broadcast %cst_22 : f32 to vector<8x32xf32>
    %52 = arith.addf %50, %51 : vector<8x32xf32>
    %cst_23 = arith.constant 5.000000e-01 : f32
    %53 = vector.broadcast %cst_23 : f32 to vector<8x32xf32>
    %54 = arith.mulf %53, %52 : vector<8x32xf32>
    %55 = vector.extract_strided_slice %46 {offsets = [0, 32], sizes = [8, 32], strides = [1, 1]} : vector<8x128xf32> to vector<8x32xf32>
    %cst_24 = arith.constant 5.000000e-01 : f32
    %56 = vector.broadcast %cst_24 : f32 to vector<8x32xf32>
    %57 = arith.mulf %56, %55 : vector<8x32xf32>
    %58 = math.tanh %57 : vector<8x32xf32>
    %cst_25 = arith.constant 1.000000e+00 : f32
    %59 = vector.broadcast %cst_25 : f32 to vector<8x32xf32>
    %60 = arith.addf %58, %59 : vector<8x32xf32>
    %cst_26 = arith.constant 5.000000e-01 : f32
    %61 = vector.broadcast %cst_26 : f32 to vector<8x32xf32>
    %62 = arith.mulf %61, %60 : vector<8x32xf32>
    %63 = vector.extract_strided_slice %46 {offsets = [0, 64], sizes = [8, 32], strides = [1, 1]} : vector<8x128xf32> to vector<8x32xf32>
    %64 = math.tanh %63 : vector<8x32xf32>
    %65 = vector.extract_strided_slice %46 {offsets = [0, 96], sizes = [8, 32], strides = [1, 1]} : vector<8x128xf32> to vector<8x32xf32>
    %cst_27 = arith.constant 5.000000e-01 : f32
    %66 = vector.broadcast %cst_27 : f32 to vector<8x32xf32>
    %67 = arith.mulf %66, %65 : vector<8x32xf32>
    %68 = math.tanh %67 : vector<8x32xf32>
    %cst_28 = arith.constant 1.000000e+00 : f32
    %69 = vector.broadcast %cst_28 : f32 to vector<8x32xf32>
    %70 = arith.addf %68, %69 : vector<8x32xf32>
    %cst_29 = arith.constant 5.000000e-01 : f32
    %71 = vector.broadcast %cst_29 : f32 to vector<8x32xf32>
    %72 = arith.mulf %71, %70 : vector<8x32xf32>
    %73 = arith.mulf %62, %39 : vector<8x32xf32>
    %74 = arith.mulf %54, %64 : vector<8x32xf32>
    %75 = arith.addf %73, %74 : vector<8x32xf32>
    %76 = math.tanh %75 : vector<8x32xf32>
    %77 = arith.mulf %72, %76 : vector<8x32xf32>
    %c2_i32 = arith.constant 2 : i32
    %78 = arith.index_cast %c2_i32 : i32 to index
    %c0_30 = arith.constant 0 : index
    %c0_31 = arith.constant 0 : index
    %79 = vector.load %arg2[%78, %c0_30, %c0_31] : memref<8x8x128xf32, #tpu.memory_space<vmem>>, vector<1x8x128xf32>
    %80 = vector.shape_cast %79 : vector<1x8x128xf32> to vector<8x128xf32>
    %cst_32 = arith.constant dense<0.000000e+00> : vector<8x128xf32>
    %81 = tpu.matmul %77, %3, %cst_32 {dimension_numbers = #tpu.dot_dimension_numbers<[1], [0], [0], [1], [0, 0, 1, 1], [], []>} : vector<8x32xf32>, vector<32x128xf32>, vector<8x128xf32> -> vector<8x128xf32>
    %82 = arith.addf %80, %81 : vector<8x128xf32>
    %83 = vector.extract_strided_slice %82 {offsets = [0, 0], sizes = [8, 32], strides = [1, 1]} : vector<8x128xf32> to vector<8x32xf32>
    %cst_33 = arith.constant 5.000000e-01 : f32
    %84 = vector.broadcast %cst_33 : f32 to vector<8x32xf32>
    %85 = arith.mulf %84, %83 : vector<8x32xf32>
    %86 = math.tanh %85 : vector<8x32xf32>
    %cst_34 = arith.constant 1.000000e+00 : f32
    %87 = vector.broadcast %cst_34 : f32 to vector<8x32xf32>
    %88 = arith.addf %86, %87 : vector<8x32xf32>
    %cst_35 = arith.constant 5.000000e-01 : f32
    %89 = vector.broadcast %cst_35 : f32 to vector<8x32xf32>
    %90 = arith.mulf %89, %88 : vector<8x32xf32>
    %91 = vector.extract_strided_slice %82 {offsets = [0, 32], sizes = [8, 32], strides = [1, 1]} : vector<8x128xf32> to vector<8x32xf32>
    %cst_36 = arith.constant 5.000000e-01 : f32
    %92 = vector.broadcast %cst_36 : f32 to vector<8x32xf32>
    %93 = arith.mulf %92, %91 : vector<8x32xf32>
    %94 = math.tanh %93 : vector<8x32xf32>
    %cst_37 = arith.constant 1.000000e+00 : f32
    %95 = vector.broadcast %cst_37 : f32 to vector<8x32xf32>
    %96 = arith.addf %94, %95 : vector<8x32xf32>
    %cst_38 = arith.constant 5.000000e-01 : f32
    %97 = vector.broadcast %cst_38 : f32 to vector<8x32xf32>
    %98 = arith.mulf %97, %96 : vector<8x32xf32>
    %99 = vector.extract_strided_slice %82 {offsets = [0, 64], sizes = [8, 32], strides = [1, 1]} : vector<8x128xf32> to vector<8x32xf32>
    %100 = math.tanh %99 : vector<8x32xf32>
    %101 = vector.extract_strided_slice %82 {offsets = [0, 96], sizes = [8, 32], strides = [1, 1]} : vector<8x128xf32> to vector<8x32xf32>
    %cst_39 = arith.constant 5.000000e-01 : f32
    %102 = vector.broadcast %cst_39 : f32 to vector<8x32xf32>
    %103 = arith.mulf %102, %101 : vector<8x32xf32>
    %104 = math.tanh %103 : vector<8x32xf32>
    %cst_40 = arith.constant 1.000000e+00 : f32
    %105 = vector.broadcast %cst_40 : f32 to vector<8x32xf32>
    %106 = arith.addf %104, %105 : vector<8x32xf32>
    %cst_41 = arith.constant 5.000000e-01 : f32
    %107 = vector.broadcast %cst_41 : f32 to vector<8x32xf32>
    %108 = arith.mulf %107, %106 : vector<8x32xf32>
    %109 = arith.mulf %98, %75 : vector<8x32xf32>
    %110 = arith.mulf %90, %100 : vector<8x32xf32>
    %111 = arith.addf %109, %110 : vector<8x32xf32>
    %112 = math.tanh %111 : vector<8x32xf32>
    %113 = arith.mulf %108, %112 : vector<8x32xf32>
    %c3_i32 = arith.constant 3 : i32
    %114 = arith.index_cast %c3_i32 : i32 to index
    %c0_42 = arith.constant 0 : index
    %c0_43 = arith.constant 0 : index
    %115 = vector.load %arg2[%114, %c0_42, %c0_43] : memref<8x8x128xf32, #tpu.memory_space<vmem>>, vector<1x8x128xf32>
    %116 = vector.shape_cast %115 : vector<1x8x128xf32> to vector<8x128xf32>
    %cst_44 = arith.constant dense<0.000000e+00> : vector<8x128xf32>
    %117 = tpu.matmul %113, %3, %cst_44 {dimension_numbers = #tpu.dot_dimension_numbers<[1], [0], [0], [1], [0, 0, 1, 1], [], []>} : vector<8x32xf32>, vector<32x128xf32>, vector<8x128xf32> -> vector<8x128xf32>
    %118 = arith.addf %116, %117 : vector<8x128xf32>
    %119 = vector.extract_strided_slice %118 {offsets = [0, 0], sizes = [8, 32], strides = [1, 1]} : vector<8x128xf32> to vector<8x32xf32>
    %cst_45 = arith.constant 5.000000e-01 : f32
    %120 = vector.broadcast %cst_45 : f32 to vector<8x32xf32>
    %121 = arith.mulf %120, %119 : vector<8x32xf32>
    %122 = math.tanh %121 : vector<8x32xf32>
    %cst_46 = arith.constant 1.000000e+00 : f32
    %123 = vector.broadcast %cst_46 : f32 to vector<8x32xf32>
    %124 = arith.addf %122, %123 : vector<8x32xf32>
    %cst_47 = arith.constant 5.000000e-01 : f32
    %125 = vector.broadcast %cst_47 : f32 to vector<8x32xf32>
    %126 = arith.mulf %125, %124 : vector<8x32xf32>
    %127 = vector.extract_strided_slice %118 {offsets = [0, 32], sizes = [8, 32], strides = [1, 1]} : vector<8x128xf32> to vector<8x32xf32>
    %cst_48 = arith.constant 5.000000e-01 : f32
    %128 = vector.broadcast %cst_48 : f32 to vector<8x32xf32>
    %129 = arith.mulf %128, %127 : vector<8x32xf32>
    %130 = math.tanh %129 : vector<8x32xf32>
    %cst_49 = arith.constant 1.000000e+00 : f32
    %131 = vector.broadcast %cst_49 : f32 to vector<8x32xf32>
    %132 = arith.addf %130, %131 : vector<8x32xf32>
    %cst_50 = arith.constant 5.000000e-01 : f32
    %133 = vector.broadcast %cst_50 : f32 to vector<8x32xf32>
    %134 = arith.mulf %133, %132 : vector<8x32xf32>
    %135 = vector.extract_strided_slice %118 {offsets = [0, 64], sizes = [8, 32], strides = [1, 1]} : vector<8x128xf32> to vector<8x32xf32>
    %136 = math.tanh %135 : vector<8x32xf32>
    %137 = vector.extract_strided_slice %118 {offsets = [0, 96], sizes = [8, 32], strides = [1, 1]} : vector<8x128xf32> to vector<8x32xf32>
    %cst_51 = arith.constant 5.000000e-01 : f32
    %138 = vector.broadcast %cst_51 : f32 to vector<8x32xf32>
    %139 = arith.mulf %138, %137 : vector<8x32xf32>
    %140 = math.tanh %139 : vector<8x32xf32>
    %cst_52 = arith.constant 1.000000e+00 : f32
    %141 = vector.broadcast %cst_52 : f32 to vector<8x32xf32>
    %142 = arith.addf %140, %141 : vector<8x32xf32>
    %cst_53 = arith.constant 5.000000e-01 : f32
    %143 = vector.broadcast %cst_53 : f32 to vector<8x32xf32>
    %144 = arith.mulf %143, %142 : vector<8x32xf32>
    %145 = arith.mulf %134, %111 : vector<8x32xf32>
    %146 = arith.mulf %126, %136 : vector<8x32xf32>
    %147 = arith.addf %145, %146 : vector<8x32xf32>
    %148 = math.tanh %147 : vector<8x32xf32>
    %149 = arith.mulf %144, %148 : vector<8x32xf32>
    %c4_i32 = arith.constant 4 : i32
    %150 = arith.index_cast %c4_i32 : i32 to index
    %c0_54 = arith.constant 0 : index
    %c0_55 = arith.constant 0 : index
    %151 = vector.load %arg2[%150, %c0_54, %c0_55] : memref<8x8x128xf32, #tpu.memory_space<vmem>>, vector<1x8x128xf32>
    %152 = vector.shape_cast %151 : vector<1x8x128xf32> to vector<8x128xf32>
    %cst_56 = arith.constant dense<0.000000e+00> : vector<8x128xf32>
    %153 = tpu.matmul %149, %3, %cst_56 {dimension_numbers = #tpu.dot_dimension_numbers<[1], [0], [0], [1], [0, 0, 1, 1], [], []>} : vector<8x32xf32>, vector<32x128xf32>, vector<8x128xf32> -> vector<8x128xf32>
    %154 = arith.addf %152, %153 : vector<8x128xf32>
    %155 = vector.extract_strided_slice %154 {offsets = [0, 0], sizes = [8, 32], strides = [1, 1]} : vector<8x128xf32> to vector<8x32xf32>
    %cst_57 = arith.constant 5.000000e-01 : f32
    %156 = vector.broadcast %cst_57 : f32 to vector<8x32xf32>
    %157 = arith.mulf %156, %155 : vector<8x32xf32>
    %158 = math.tanh %157 : vector<8x32xf32>
    %cst_58 = arith.constant 1.000000e+00 : f32
    %159 = vector.broadcast %cst_58 : f32 to vector<8x32xf32>
    %160 = arith.addf %158, %159 : vector<8x32xf32>
    %cst_59 = arith.constant 5.000000e-01 : f32
    %161 = vector.broadcast %cst_59 : f32 to vector<8x32xf32>
    %162 = arith.mulf %161, %160 : vector<8x32xf32>
    %163 = vector.extract_strided_slice %154 {offsets = [0, 32], sizes = [8, 32], strides = [1, 1]} : vector<8x128xf32> to vector<8x32xf32>
    %cst_60 = arith.constant 5.000000e-01 : f32
    %164 = vector.broadcast %cst_60 : f32 to vector<8x32xf32>
    %165 = arith.mulf %164, %163 : vector<8x32xf32>
    %166 = math.tanh %165 : vector<8x32xf32>
    %cst_61 = arith.constant 1.000000e+00 : f32
    %167 = vector.broadcast %cst_61 : f32 to vector<8x32xf32>
    %168 = arith.addf %166, %167 : vector<8x32xf32>
    %cst_62 = arith.constant 5.000000e-01 : f32
    %169 = vector.broadcast %cst_62 : f32 to vector<8x32xf32>
    %170 = arith.mulf %169, %168 : vector<8x32xf32>
    %171 = vector.extract_strided_slice %154 {offsets = [0, 64], sizes = [8, 32], strides = [1, 1]} : vector<8x128xf32> to vector<8x32xf32>
    %172 = math.tanh %171 : vector<8x32xf32>
    %173 = vector.extract_strided_slice %154 {offsets = [0, 96], sizes = [8, 32], strides = [1, 1]} : vector<8x128xf32> to vector<8x32xf32>
    %cst_63 = arith.constant 5.000000e-01 : f32
    %174 = vector.broadcast %cst_63 : f32 to vector<8x32xf32>
    %175 = arith.mulf %174, %173 : vector<8x32xf32>
    %176 = math.tanh %175 : vector<8x32xf32>
    %cst_64 = arith.constant 1.000000e+00 : f32
    %177 = vector.broadcast %cst_64 : f32 to vector<8x32xf32>
    %178 = arith.addf %176, %177 : vector<8x32xf32>
    %cst_65 = arith.constant 5.000000e-01 : f32
    %179 = vector.broadcast %cst_65 : f32 to vector<8x32xf32>
    %180 = arith.mulf %179, %178 : vector<8x32xf32>
    %181 = arith.mulf %170, %147 : vector<8x32xf32>
    %182 = arith.mulf %162, %172 : vector<8x32xf32>
    %183 = arith.addf %181, %182 : vector<8x32xf32>
    %184 = math.tanh %183 : vector<8x32xf32>
    %185 = arith.mulf %180, %184 : vector<8x32xf32>
    %c5_i32 = arith.constant 5 : i32
    %186 = arith.index_cast %c5_i32 : i32 to index
    %c0_66 = arith.constant 0 : index
    %c0_67 = arith.constant 0 : index
    %187 = vector.load %arg2[%186, %c0_66, %c0_67] : memref<8x8x128xf32, #tpu.memory_space<vmem>>, vector<1x8x128xf32>
    %188 = vector.shape_cast %187 : vector<1x8x128xf32> to vector<8x128xf32>
    %cst_68 = arith.constant dense<0.000000e+00> : vector<8x128xf32>
    %189 = tpu.matmul %185, %3, %cst_68 {dimension_numbers = #tpu.dot_dimension_numbers<[1], [0], [0], [1], [0, 0, 1, 1], [], []>} : vector<8x32xf32>, vector<32x128xf32>, vector<8x128xf32> -> vector<8x128xf32>
    %190 = arith.addf %188, %189 : vector<8x128xf32>
    %191 = vector.extract_strided_slice %190 {offsets = [0, 0], sizes = [8, 32], strides = [1, 1]} : vector<8x128xf32> to vector<8x32xf32>
    %cst_69 = arith.constant 5.000000e-01 : f32
    %192 = vector.broadcast %cst_69 : f32 to vector<8x32xf32>
    %193 = arith.mulf %192, %191 : vector<8x32xf32>
    %194 = math.tanh %193 : vector<8x32xf32>
    %cst_70 = arith.constant 1.000000e+00 : f32
    %195 = vector.broadcast %cst_70 : f32 to vector<8x32xf32>
    %196 = arith.addf %194, %195 : vector<8x32xf32>
    %cst_71 = arith.constant 5.000000e-01 : f32
    %197 = vector.broadcast %cst_71 : f32 to vector<8x32xf32>
    %198 = arith.mulf %197, %196 : vector<8x32xf32>
    %199 = vector.extract_strided_slice %190 {offsets = [0, 32], sizes = [8, 32], strides = [1, 1]} : vector<8x128xf32> to vector<8x32xf32>
    %cst_72 = arith.constant 5.000000e-01 : f32
    %200 = vector.broadcast %cst_72 : f32 to vector<8x32xf32>
    %201 = arith.mulf %200, %199 : vector<8x32xf32>
    %202 = math.tanh %201 : vector<8x32xf32>
    %cst_73 = arith.constant 1.000000e+00 : f32
    %203 = vector.broadcast %cst_73 : f32 to vector<8x32xf32>
    %204 = arith.addf %202, %203 : vector<8x32xf32>
    %cst_74 = arith.constant 5.000000e-01 : f32
    %205 = vector.broadcast %cst_74 : f32 to vector<8x32xf32>
    %206 = arith.mulf %205, %204 : vector<8x32xf32>
    %207 = vector.extract_strided_slice %190 {offsets = [0, 64], sizes = [8, 32], strides = [1, 1]} : vector<8x128xf32> to vector<8x32xf32>
    %208 = math.tanh %207 : vector<8x32xf32>
    %209 = vector.extract_strided_slice %190 {offsets = [0, 96], sizes = [8, 32], strides = [1, 1]} : vector<8x128xf32> to vector<8x32xf32>
    %cst_75 = arith.constant 5.000000e-01 : f32
    %210 = vector.broadcast %cst_75 : f32 to vector<8x32xf32>
    %211 = arith.mulf %210, %209 : vector<8x32xf32>
    %212 = math.tanh %211 : vector<8x32xf32>
    %cst_76 = arith.constant 1.000000e+00 : f32
    %213 = vector.broadcast %cst_76 : f32 to vector<8x32xf32>
    %214 = arith.addf %212, %213 : vector<8x32xf32>
    %cst_77 = arith.constant 5.000000e-01 : f32
    %215 = vector.broadcast %cst_77 : f32 to vector<8x32xf32>
    %216 = arith.mulf %215, %214 : vector<8x32xf32>
    %217 = arith.mulf %206, %183 : vector<8x32xf32>
    %218 = arith.mulf %198, %208 : vector<8x32xf32>
    %219 = arith.addf %217, %218 : vector<8x32xf32>
    %220 = math.tanh %219 : vector<8x32xf32>
    %221 = arith.mulf %216, %220 : vector<8x32xf32>
    %c6_i32 = arith.constant 6 : i32
    %222 = arith.index_cast %c6_i32 : i32 to index
    %c0_78 = arith.constant 0 : index
    %c0_79 = arith.constant 0 : index
    %223 = vector.load %arg2[%222, %c0_78, %c0_79] : memref<8x8x128xf32, #tpu.memory_space<vmem>>, vector<1x8x128xf32>
    %224 = vector.shape_cast %223 : vector<1x8x128xf32> to vector<8x128xf32>
    %cst_80 = arith.constant dense<0.000000e+00> : vector<8x128xf32>
    %225 = tpu.matmul %221, %3, %cst_80 {dimension_numbers = #tpu.dot_dimension_numbers<[1], [0], [0], [1], [0, 0, 1, 1], [], []>} : vector<8x32xf32>, vector<32x128xf32>, vector<8x128xf32> -> vector<8x128xf32>
    %226 = arith.addf %224, %225 : vector<8x128xf32>
    %227 = vector.extract_strided_slice %226 {offsets = [0, 0], sizes = [8, 32], strides = [1, 1]} : vector<8x128xf32> to vector<8x32xf32>
    %cst_81 = arith.constant 5.000000e-01 : f32
    %228 = vector.broadcast %cst_81 : f32 to vector<8x32xf32>
    %229 = arith.mulf %228, %227 : vector<8x32xf32>
    %230 = math.tanh %229 : vector<8x32xf32>
    %cst_82 = arith.constant 1.000000e+00 : f32
    %231 = vector.broadcast %cst_82 : f32 to vector<8x32xf32>
    %232 = arith.addf %230, %231 : vector<8x32xf32>
    %cst_83 = arith.constant 5.000000e-01 : f32
    %233 = vector.broadcast %cst_83 : f32 to vector<8x32xf32>
    %234 = arith.mulf %233, %232 : vector<8x32xf32>
    %235 = vector.extract_strided_slice %226 {offsets = [0, 32], sizes = [8, 32], strides = [1, 1]} : vector<8x128xf32> to vector<8x32xf32>
    %cst_84 = arith.constant 5.000000e-01 : f32
    %236 = vector.broadcast %cst_84 : f32 to vector<8x32xf32>
    %237 = arith.mulf %236, %235 : vector<8x32xf32>
    %238 = math.tanh %237 : vector<8x32xf32>
    %cst_85 = arith.constant 1.000000e+00 : f32
    %239 = vector.broadcast %cst_85 : f32 to vector<8x32xf32>
    %240 = arith.addf %238, %239 : vector<8x32xf32>
    %cst_86 = arith.constant 5.000000e-01 : f32
    %241 = vector.broadcast %cst_86 : f32 to vector<8x32xf32>
    %242 = arith.mulf %241, %240 : vector<8x32xf32>
    %243 = vector.extract_strided_slice %226 {offsets = [0, 64], sizes = [8, 32], strides = [1, 1]} : vector<8x128xf32> to vector<8x32xf32>
    %244 = math.tanh %243 : vector<8x32xf32>
    %245 = vector.extract_strided_slice %226 {offsets = [0, 96], sizes = [8, 32], strides = [1, 1]} : vector<8x128xf32> to vector<8x32xf32>
    %cst_87 = arith.constant 5.000000e-01 : f32
    %246 = vector.broadcast %cst_87 : f32 to vector<8x32xf32>
    %247 = arith.mulf %246, %245 : vector<8x32xf32>
    %248 = math.tanh %247 : vector<8x32xf32>
    %cst_88 = arith.constant 1.000000e+00 : f32
    %249 = vector.broadcast %cst_88 : f32 to vector<8x32xf32>
    %250 = arith.addf %248, %249 : vector<8x32xf32>
    %cst_89 = arith.constant 5.000000e-01 : f32
    %251 = vector.broadcast %cst_89 : f32 to vector<8x32xf32>
    %252 = arith.mulf %251, %250 : vector<8x32xf32>
    %253 = arith.mulf %242, %219 : vector<8x32xf32>
    %254 = arith.mulf %234, %244 : vector<8x32xf32>
    %255 = arith.addf %253, %254 : vector<8x32xf32>
    %256 = math.tanh %255 : vector<8x32xf32>
    %257 = arith.mulf %252, %256 : vector<8x32xf32>
    %c7_i32 = arith.constant 7 : i32
    %258 = arith.index_cast %c7_i32 : i32 to index
    %c0_90 = arith.constant 0 : index
    %c0_91 = arith.constant 0 : index
    %259 = vector.load %arg2[%258, %c0_90, %c0_91] : memref<8x8x128xf32, #tpu.memory_space<vmem>>, vector<1x8x128xf32>
    %260 = vector.shape_cast %259 : vector<1x8x128xf32> to vector<8x128xf32>
    %cst_92 = arith.constant dense<0.000000e+00> : vector<8x128xf32>
    %261 = tpu.matmul %257, %3, %cst_92 {dimension_numbers = #tpu.dot_dimension_numbers<[1], [0], [0], [1], [0, 0, 1, 1], [], []>} : vector<8x32xf32>, vector<32x128xf32>, vector<8x128xf32> -> vector<8x128xf32>
    %262 = arith.addf %260, %261 : vector<8x128xf32>
    %263 = vector.extract_strided_slice %262 {offsets = [0, 0], sizes = [8, 32], strides = [1, 1]} : vector<8x128xf32> to vector<8x32xf32>
    %cst_93 = arith.constant 5.000000e-01 : f32
    %264 = vector.broadcast %cst_93 : f32 to vector<8x32xf32>
    %265 = arith.mulf %264, %263 : vector<8x32xf32>
    %266 = math.tanh %265 : vector<8x32xf32>
    %cst_94 = arith.constant 1.000000e+00 : f32
    %267 = vector.broadcast %cst_94 : f32 to vector<8x32xf32>
    %268 = arith.addf %266, %267 : vector<8x32xf32>
    %cst_95 = arith.constant 5.000000e-01 : f32
    %269 = vector.broadcast %cst_95 : f32 to vector<8x32xf32>
    %270 = arith.mulf %269, %268 : vector<8x32xf32>
    %271 = vector.extract_strided_slice %262 {offsets = [0, 32], sizes = [8, 32], strides = [1, 1]} : vector<8x128xf32> to vector<8x32xf32>
    %cst_96 = arith.constant 5.000000e-01 : f32
    %272 = vector.broadcast %cst_96 : f32 to vector<8x32xf32>
    %273 = arith.mulf %272, %271 : vector<8x32xf32>
    %274 = math.tanh %273 : vector<8x32xf32>
    %cst_97 = arith.constant 1.000000e+00 : f32
    %275 = vector.broadcast %cst_97 : f32 to vector<8x32xf32>
    %276 = arith.addf %274, %275 : vector<8x32xf32>
    %cst_98 = arith.constant 5.000000e-01 : f32
    %277 = vector.broadcast %cst_98 : f32 to vector<8x32xf32>
    %278 = arith.mulf %277, %276 : vector<8x32xf32>
    %279 = vector.extract_strided_slice %262 {offsets = [0, 64], sizes = [8, 32], strides = [1, 1]} : vector<8x128xf32> to vector<8x32xf32>
    %280 = math.tanh %279 : vector<8x32xf32>
    %281 = vector.extract_strided_slice %262 {offsets = [0, 96], sizes = [8, 32], strides = [1, 1]} : vector<8x128xf32> to vector<8x32xf32>
    %cst_99 = arith.constant 5.000000e-01 : f32
    %282 = vector.broadcast %cst_99 : f32 to vector<8x32xf32>
    %283 = arith.mulf %282, %281 : vector<8x32xf32>
    %284 = math.tanh %283 : vector<8x32xf32>
    %cst_100 = arith.constant 1.000000e+00 : f32
    %285 = vector.broadcast %cst_100 : f32 to vector<8x32xf32>
    %286 = arith.addf %284, %285 : vector<8x32xf32>
    %cst_101 = arith.constant 5.000000e-01 : f32
    %287 = vector.broadcast %cst_101 : f32 to vector<8x32xf32>
    %288 = arith.mulf %287, %286 : vector<8x32xf32>
    %289 = arith.mulf %278, %255 : vector<8x32xf32>
    %290 = arith.mulf %270, %280 : vector<8x32xf32>
    %291 = arith.addf %289, %290 : vector<8x32xf32>
    %292 = math.tanh %291 : vector<8x32xf32>
    %293 = arith.mulf %288, %292 : vector<8x32xf32>
    %c8_i32 = arith.constant 8 : i32
    %c0_102 = arith.constant 0 : index
    %c0_103 = arith.constant 0 : index
    %294 = vector.load %arg4[%c0_102, %c0_103] : memref<8x32xf32, #tpu.memory_space<vmem>>, vector<8x32xf32>
    tpu.vector_store %arg4[%c0_102, %c0_103], %293 {strides = array<i32>} : memref<8x32xf32, #tpu.memory_space<vmem>>, vector<8x32xf32>,
    %c0_104 = arith.constant 0 : index
    %c0_105 = arith.constant 0 : index
    %295 = vector.load %arg5[%c0_104, %c0_105] : memref<8x32xf32, #tpu.memory_space<vmem>>, vector<8x32xf32>
    tpu.vector_store %arg5[%c0_104, %c0_105], %291 {strides = array<i32>} : memref<8x32xf32, #tpu.memory_space<vmem>>, vector<8x32xf32>,
    return
  }
  func.func @transform_0(%arg0: i32, %arg1: i32) -> (i32, i32, i32) {
    %c0_i32 = arith.constant 0 : i32
    %c0_i32_0 = arith.constant 0 : i32
    return %arg1, %arg0, %c0_i32 : i32, i32, i32
  }
  func.func @transform_1(%arg0: i32, %arg1: i32) -> (i32, i32) {
    %c0_i32 = arith.constant 0 : i32
    %c0_i32_0 = arith.constant 0 : i32
    %c0_i32_1 = arith.constant 0 : i32
    return %c0_i32, %c0_i32_0 : i32, i32
  }
  func.func @transform_2(%arg0: i32, %arg1: i32) -> (i32, i32) {
    %c0_i32 = arith.constant 0 : i32
    %c0_i32_0 = arith.constant 0 : i32
    return %arg0, %c0_i32 : i32, i32
  }
}

</mosaic_0001>

<bundles_post_ra>
// kernel: tpu_custom_call.1
= control target key start
LH: loop header
LB: loop body
LE: loop exit
PB: predicated region body
PF: predicated region fallthrough
CT: control target
= control target key end

     0   :  { %7 = vsyncpa [#allocation4], 0  ;;  %s1357_s0 = inlined_call_operand.hbm [shape: f32[8,8,128], index: 0, kind: input, shape index: {}]   ;;  %s1358_s1 = inlined_call_operand.hbm [shape: f32[32,128], index: 1, kind: input, shape index: {}]   ;;  %s1359_s2 = inlined_call_operand.hbm [shape: f32[8,32], index: 2, kind: output, shape index: {}]  }
   0x1   :  { %8 = vsyncpa [#allocation7], 0 }
   0x2   :  { %9 = vsyncpa [#allocation5], 0  ;;  %s1196_s9 = smov [#allocation3]   ;;  %s1124_s13 = scalar_lea.hbm %s1357_s0, 1024 }
   0x3   :  { %s15_s10 = sshll.u32 %s1196_s9, 4  ;;  %p1125_p0 = scmp.ne.s32.totalorder %s1357_s0, %s1124_s13  ;;  %s16_s10 = int_to_ptr.vmem [resolvable:$true] %s15_s10 }
   0x4   :  { %p1128_p1 = scmp.lt.u32.totalorder %s1124_s13, %s1357_s0 }
   0x6   :  { %p1130_p2 = pnand %p1128_p1, %p1125_p0 }
   0x8   :  { %1133 = shalt.err (!%p1130_p2)
}
   0x9   :  { %s1134_s18 = scalar_lea.vmem %s16_s10, 1024  ;;  %p1139_p4 = scmp.lt.s32.totalorder %s16_s10, %s16_s10 }
   0xa   :  { %p1135_p3 = scmp.ne.s32.totalorder %s16_s10, %s1134_s18  ;;  %p1140_p5 = scmp.lt.s32.totalorder %s1134_s18, %s1134_s18 }
   0xc   :  { %p1141_p6 = por %p1140_p5, %p1139_p4 }
   0xe   :  { %p1142_p7 = pnand %p1141_p6, %p1135_p3 }
  0x10   :  { %1145 = shalt.err (!%p1142_p7)
}
  0x11   :  { %s1197_s19 = smov 128   ;;  %s1198_s20 = smov 8  }
  0x12   :  { %21 = dma.hbm_to_vmem [thread:$0]  %s1357_s0, 1024, %s16_s10, [#allocation4], %s1197_s19, %s1197_s19, %s1198_s20  }
  0x13   :  { %s1199_s23 = smov [#allocation6]   ;;  %s1146_s27 = scalar_lea.hbm %s1358_s1, 512 }
  0x14   :  { %s27_s24 = sshll.u32 %s1199_s23, 4  ;;  %p1147_p8 = scmp.ne.s32.totalorder %s1358_s1, %s1146_s27  ;;  %s28_s24 = int_to_ptr.vmem [resolvable:$true] %s27_s24 }
  0x15   :  { %p1150_p9 = scmp.lt.u32.totalorder %s1146_s27, %s1358_s1 }
  0x17   :  { %p1152_p10 = pnand %p1150_p9, %p1147_p8 }
  0x19   :  { %1155 = shalt.err (!%p1152_p10)
}
  0x1a   :  { %s1156_s4 = scalar_lea.vmem %s28_s24, 512  ;;  %p1161_p12 = scmp.lt.s32.totalorder %s28_s24, %s28_s24 }
  0x1b   :  { %p1157_p11 = scmp.ne.s32.totalorder %s28_s24, %s1156_s4  ;;  %p1162_p13 = scmp.lt.s32.totalorder %s1156_s4, %s1156_s4 }
  0x1d   :  { %p1163_p0 = por %p1162_p13, %p1161_p12 }
  0x1f   :  { %p1164_p1 = pnand %p1163_p0, %p1157_p11 }
  0x21   :  { %1167 = shalt.err (!%p1164_p1)
}
  0x22   :  { %33 = dma.hbm_to_vmem [thread:$0]  %s1358_s1, 512, %s28_s24, [#allocation7], %s1197_s19, %s1197_s19, %s1198_s20  }
  0x23   :  { %1190 = dma.done.wait [#allocation4], 1024  }
  0x24   :  { %1191 = vsyncadd [#allocation4], 4294966272 }
  0x25   :  { %1192 = dma.done.wait [#allocation7], 512  }
  0x26   :  { %1193 = vsyncadd [#allocation7], 4294966784  ;;  %vm44_vm0 = vcmask 261120   ;;  %v1200_v0 = vmov 0.0|0.0   ;;  %vm1201_vm1 = vmmov 0   ;;  %v1202_v1 = vmov 0.0  }
  0x27   :  { %1017 = vmatprep.subr.bf16.mxu0 %v1200_v0  ;;  %937 = vmatprep.mubr.msk.f32.mxu0 %vm1201_vm1, %v1202_v1  ;;  %45 = vst.msk [vmem:[#allocation8] sm:$0xff] %vm44_vm0, %v1202_v1  ;;  %46 = vst.msk [vmem:[#allocation2] sm:$0xff] %vm44_vm0, %v1202_v1  ;;  %v47_v2 = vld [vmem:[#allocation6] sm:$0xff]  ;;  %v48_v3 = vld [vmem:[#allocation6 + $0x8] sm:$0xff]  ;;  %s1203_s1 = smov 64   ;;  %s1204_s6 = smov 32  }
  0x28   :  { %1023 = vmatprep.subr.bf16.mxu1 %v1200_v0  ;;  %948 = vmatprep.mubr.msk.f32.mxu1 %vm1201_vm1, %v1202_v1  ;;  %v49_v4 = vld [vmem:[#allocation6 + $0x10] sm:$0xff]  ;;  %v1256_v5 = vpack.c.bf16 %v48_v3, %v47_v2  ;;  %v50_v6 = vld [vmem:[#allocation6 + $0x18] sm:$0xff]  ;;  %v53_v9 = vld [vmem:[#allocation3] sm:$0xff]  ;;  %s1205_s7 = smov 96   ;;  %s1206_s8 = smov [#allocation8]  }
  0x29   :  { %v1259_v7 = vpack.c.bf16 %v50_v6, %v49_v4  ;;  %v156_v29 = vld [vmem:[#allocation3 + $0x8] sm:$0xff]  ;;  %v256_v47 = vld [vmem:[#allocation3 + $0x10] sm:$0xff]  ;;  %v356_v3 = vld [vmem:[#allocation3 + $0x18] sm:$0xff]  ;;  %s871_s9 = sshll.u32 %s1206_s8, 4  ;;  %s872_s9 = int_to_ptr.vmem [resolvable:$true] %s871_s9 }
  0x2a   :  { %1019 = vmatpush3.bf16.msra.mxu0 %v1256_v5  ;;  %1025 = vmatpush3.bf16.msra.mxu1 %v1256_v5  ;;  %s1168_s10 = scalar_lea.vmem %s872_s9, 128  ;;  %p1173_p3 = scmp.lt.s32.totalorder %s872_s9, %s872_s9 }
  0x2b   :  { %1020 = vmatprep.subr.bf16.mxu0 %v1200_v0  ;;  %1026 = vmatprep.subr.bf16.mxu1 %v1200_v0  ;;  %p1169_p2 = scmp.ne.s32.totalorder %s872_s9, %s1168_s10  ;;  %p1174_p4 = scmp.lt.s32.totalorder %s1168_s10, %s1168_s10 }
  0x2d   :  { %p1175_p5 = por %p1174_p4, %p1173_p3 }
  0x2e   :  { %1022 = vmatpush3.bf16.msra.mxu0 %v1259_v7  ;;  %v51_v8 = vld [vmem:[#allocation8] sm:$0xff]  ;;  %1028 = vmatpush3.bf16.msra.mxu1 %v1259_v7  ;;  %v52_v14 = vld [vmem:[#allocation2] sm:$0xff] }
  0x2f   :  { %1029 = vmatprep.subr.bf16.mxu0 %v1200_v0  ;;  %1035 = vmatprep.subr.bf16.mxu1 %v1200_v0  ;;  %p1176_p6 = pnand %p1175_p5, %p1169_p2 }
  0x31   :  { %938 = vmatmul.mubr.msk.f32.vlgmr.msra.gmra.mrb[0].mxu0 %vm44_vm0, %v51_v8 }
  0x32   :  { %1031 = vmatpush3.bf16.msra.mxu0 %v1256_v5  ;;  %959 = vmatprep.mubr.msk.f32.mxu0 %vm1201_vm1, %v1202_v1 }
  0x33   :  { %1032 = vmatprep.subr.bf16.mxu0 %v1200_v0 }
  0x36   :  { %1034 = vmatpush3.bf16.msra.mxu0 %v1259_v7 }
  0x37   :  { %1041 = vmatprep.subr.bf16.mxu0 %v1200_v0 }
 0x104   :  { %v124_v10 = vpop.f32.mrb[0].mxu0 }
 0x105   :  { %v128_v11 = vadd.f32 %v124_v10, %v53_v9  ;;  %v939_v12 = vpop.f32.mrb[1].mxu0 }
 0x107   :  { %1076 = vtanh.f32 %v128_v11  ;;  %v129_v15 = vmul.f32 0.5, %v128_v11 }
 0x109   :  { %1078 = vtanh.f32 %v129_v15 }
 0x111   :  { %v1077_v13 = vpop.eup %1076 }
 0x112   :  { %140 = vrot.lane.b32.xlu0 %v1077_v13, %s1203_s1 }
 0x113   :  { %v1079_v16 = vpop.eup %1078 }
 0x114   :  { %v131_v17 = vadd.f32 1.0, %v1079_v16 }
 0x116   :  { %135 = vrot.lane.b32.xlu0 %v52_v14, %s1204_s6  ;;  %v132_v18 = vmul.f32 0.5, %v131_v17 }
 0x184   :  { %v141_v19 = vpop.permute.xlu0 %140 }
 0x185   :  { %v143_v20 = vmul.f32 %v141_v19, %v132_v18 }
 0x187   :  { %145 = vrot.lane.b32.xlu1 %v143_v20, %s1204_s6 }
 0x188   :  { %v136_v21 = vpop.permute.xlu0 %135 }
 0x189   :  { %v138_v22 = vmul.f32 %v136_v21, %v132_v18 }
 0x1f9   :  { %v146_v23 = vpop.permute.xlu1 %145 }
 0x1fa   :  { %v148_v24 = vadd.f32 %v146_v23, %v138_v22  ;;  %v456_v23 = vld [vmem:[#allocation3 + $0x20] sm:$0xff] }
 0x1fc   :  { %1080 = vtanh.f32 %v148_v24 }
 0x206   :  { %v1081_v25 = vpop.eup %1080 }
 0x207   :  { %151 = vrot.lane.b32.xlu1 %v1081_v25, %s1203_s1 }
 0x279   :  { %v152_v26 = vpop.permute.xlu1 %151 }
 0x27a   :  { %v154_v27 = vmul.f32 %v152_v26, %v132_v18 }
 0x27c   :  { %158 = vrot.lane.b32.xlu0 %v154_v27, %s1204_s6 }
 0x2ee   :  { %v159_v28 = vpop.permute.xlu0 %158 }
 0x2ef   :  { %949 = vmatmul.mubr.msk.f32.vlgmr.msra.gmra.mrb[0].mxu1 %vm44_vm0, %v159_v28 }
 0x2f0   :  { %1037 = vmatpush3.bf16.msra.mxu1 %v1256_v5  ;;  %970 = vmatprep.mubr.msk.f32.mxu1 %vm1201_vm1, %v1202_v1 }
 0x2f1   :  { %1038 = vmatprep.subr.bf16.mxu1 %v1200_v0 }
 0x2f4   :  { %1040 = vmatpush3.bf16.msra.mxu1 %v1259_v7 }
 0x2f5   :  { %1047 = vmatprep.subr.bf16.mxu1 %v1200_v0 }
 0x3c2   :  { %v228_v30 = vpop.f32.mrb[0].mxu1 }
 0x3c3   :  { %v232_v31 = vadd.f32 %v228_v30, %v156_v29  ;;  %v950_v32 = vpop.f32.mrb[1].mxu1 }
 0x3c5   :  { %1082 = vtanh.f32 %v232_v31  ;;  %v233_v34 = vmul.f32 0.5, %v232_v31 }
 0x3c7   :  { %1084 = vtanh.f32 %v233_v34 }
 0x3cf   :  { %v1083_v33 = vpop.eup %1082 }
 0x3d0   :  { %240 = vrot.lane.b32.xlu1 %v1083_v33, %s1203_s1 }
 0x3d1   :  { %v1085_v35 = vpop.eup %1084 }
 0x3d2   :  { %v235_v36 = vadd.f32 1.0, %v1085_v35 }
 0x3d4   :  { %v236_v37 = vmul.f32 0.5, %v235_v36 }
 0x3d6   :  { %v238_v40 = vmul.f32 %v236_v37, %v148_v24 }
 0x442   :  { %v241_v38 = vpop.permute.xlu1 %240 }
 0x443   :  { %v243_v39 = vmul.f32 %v241_v38, %v236_v37 }
 0x445   :  { %245 = vrot.lane.b32.xlu0 %v243_v39, %s1204_s6 }
 0x4b7   :  { %v246_v41 = vpop.permute.xlu0 %245 }
 0x4b8   :  { %v248_v42 = vadd.f32 %v246_v41, %v238_v40  ;;  %v556_v41 = vld [vmem:[#allocation3 + $0x28] sm:$0xff] }
 0x4ba   :  { %1086 = vtanh.f32 %v248_v42 }
 0x4c4   :  { %v1087_v43 = vpop.eup %1086 }
 0x4c5   :  { %251 = vrot.lane.b32.xlu1 %v1087_v43, %s1203_s1 }
 0x537   :  { %v252_v44 = vpop.permute.xlu1 %251 }
 0x538   :  { %v254_v45 = vmul.f32 %v252_v44, %v236_v37 }
 0x53a   :  { %258 = vrot.lane.b32.xlu0 %v254_v45, %s1204_s6 }
 0x5ac   :  { %v259_v46 = vpop.permute.xlu0 %258 }
 0x5ad   :  { %960 = vmatmul.mubr.msk.f32.vlgmr.msra.gmra.mrb[2].mxu0 %vm44_vm0, %v259_v46 }
 0x5ae   :  { %1043 = vmatpush3.bf16.msra.mxu0 %v1256_v5  ;;  %981 = vmatprep.mubr.msk.f32.mxu0 %vm1201_vm1, %v1202_v1 }
 0x5af   :  { %1044 = vmatprep.subr.bf16.mxu0 %v1200_v0 }
 0x5b2   :  { %1046 = vmatpush3.bf16.msra.mxu0 %v1259_v7 }
 0x5b3   :  { %1053 = vmatprep.subr.bf16.mxu0 %v1200_v0 }
 0x680   :  { %v328_v48 = vpop.f32.mrb[2].mxu0 }
 0x681   :  { %v332_v49 = vadd.f32 %v328_v48, %v256_v47  ;;  %v961_v50 = vpop.f32.mrb[3].mxu0 }
 0x683   :  { %1088 = vtanh.f32 %v332_v49  ;;  %v333_v52 = vmul.f32 0.5, %v332_v49 }
 0x685   :  { %1090 = vtanh.f32 %v333_v52 }
 0x68d   :  { %v1089_v51 = vpop.eup %1088 }
 0x68e   :  { %340 = vrot.lane.b32.xlu1 %v1089_v51, %s1203_s1 }
 0x68f   :  { %v1091_v53 = vpop.eup %1090 }
 0x690   :  { %v335_v54 = vadd.f32 1.0, %v1091_v53 }
 0x692   :  { %v336_v55 = vmul.f32 0.5, %v335_v54 }
 0x694   :  { %v338_v58 = vmul.f32 %v336_v55, %v248_v42 }
 0x700   :  { %v341_v56 = vpop.permute.xlu1 %340 }
 0x701   :  { %v343_v57 = vmul.f32 %v341_v56, %v336_v55 }
 0x703   :  { %345 = vrot.lane.b32.xlu0 %v343_v57, %s1204_s6 }
 0x775   :  { %v346_v59 = vpop.permute.xlu0 %345 }
 0x776   :  { %v348_v60 = vadd.f32 %v346_v59, %v338_v58 }
 0x778   :  { %1092 = vtanh.f32 %v348_v60 }
 0x782   :  { %v1093_v61 = vpop.eup %1092 }
 0x783   :  { %351 = vrot.lane.b32.xlu1 %v1093_v61, %s1203_s1 }
 0x7f5   :  { %v352_v62 = vpop.permute.xlu1 %351 }
 0x7f6   :  { %v354_v63 = vmul.f32 %v352_v62, %v336_v55  ;;  %v656_v55 = vld [vmem:[#allocation3 + $0x30] sm:$0xff] }
 0x7f8   :  { %358 = vrot.lane.b32.xlu0 %v354_v63, %s1204_s6 }
 0x86a   :  { %v359_v2 = vpop.permute.xlu0 %358 }
 0x86b   :  { %971 = vmatmul.mubr.msk.f32.vlgmr.msra.gmra.mrb[2].mxu1 %vm44_vm0, %v359_v2 }
 0x86c   :  { %1049 = vmatpush3.bf16.msra.mxu1 %v1256_v5  ;;  %992 = vmatprep.mubr.msk.f32.mxu1 %vm1201_vm1, %v1202_v1 }
 0x86d   :  { %1050 = vmatprep.subr.bf16.mxu1 %v1200_v0 }
 0x870   :  { %1052 = vmatpush3.bf16.msra.mxu1 %v1259_v7 }
 0x871   :  { %1059 = vmatprep.subr.bf16.mxu1 %v1200_v0 }
 0x93e   :  { %v428_v4 = vpop.f32.mrb[2].mxu1 }
 0x93f   :  { %v432_v6 = vadd.f32 %v428_v4, %v356_v3  ;;  %v972_v8 = vpop.f32.mrb[3].mxu1 }
 0x941   :  { %1094 = vtanh.f32 %v432_v6  ;;  %v433_v10 = vmul.f32 0.5, %v432_v6 }
 0x943   :  { %1096 = vtanh.f32 %v433_v10 }
 0x94b   :  { %v1095_v9 = vpop.eup %1094 }
 0x94c   :  { %440 = vrot.lane.b32.xlu1 %v1095_v9, %s1203_s1 }
 0x94d   :  { %v1097_v11 = vpop.eup %1096 }
 0x94e   :  { %v435_v12 = vadd.f32 1.0, %v1097_v11 }
 0x950   :  { %v436_v13 = vmul.f32 0.5, %v435_v12 }
 0x952   :  { %v438_v16 = vmul.f32 %v436_v13, %v348_v60 }
 0x9be   :  { %v441_v14 = vpop.permute.xlu1 %440 }
 0x9bf   :  { %v443_v15 = vmul.f32 %v441_v14, %v436_v13 }
 0x9c1   :  { %445 = vrot.lane.b32.xlu0 %v443_v15, %s1204_s6 }
 0xa33   :  { %v446_v17 = vpop.permute.xlu0 %445 }
 0xa34   :  { %v448_v18 = vadd.f32 %v446_v17, %v438_v16 }
 0xa36   :  { %1098 = vtanh.f32 %v448_v18 }
 0xa40   :  { %v1099_v19 = vpop.eup %1098 }
 0xa41   :  { %451 = vrot.lane.b32.xlu1 %v1099_v19, %s1203_s1 }
 0xab3   :  { %v452_v20 = vpop.permute.xlu1 %451 }
 0xab4   :  { %v454_v21 = vmul.f32 %v452_v20, %v436_v13  ;;  %v756_v13 = vld [vmem:[#allocation3 + $0x38] sm:$0xff] }
 0xab6   :  { %458 = vrot.lane.b32.xlu0 %v454_v21, %s1204_s6 }
 0xb28   :  { %v459_v22 = vpop.permute.xlu0 %458 }
 0xb29   :  { %982 = vmatmul.mubr.msk.f32.vlgmr.msra.gmra.mrb[4].mxu0 %vm44_vm0, %v459_v22 }
 0xb2a   :  { %1055 = vmatpush3.bf16.msra.mxu0 %v1256_v5  ;;  %1003 = vmatprep.mubr.msk.f32.mxu0 %vm1201_vm1, %v1202_v1 }
 0xb2b   :  { %1056 = vmatprep.subr.bf16.mxu0 %v1200_v0 }
 0xb2e   :  { %1058 = vmatpush3.bf16.msra.mxu0 %v1259_v7 }
 0xbfc   :  { %v528_v24 = vpop.f32.mrb[4].mxu0 }
 0xbfd   :  { %v532_v25 = vadd.f32 %v528_v24, %v456_v23  ;;  %v983_v26 = vpop.f32.mrb[5].mxu0 }
 0xbff   :  { %1100 = vtanh.f32 %v532_v25  ;;  %v533_v28 = vmul.f32 0.5, %v532_v25 }
 0xc01   :  { %1102 = vtanh.f32 %v533_v28 }
 0xc09   :  { %v1101_v27 = vpop.eup %1100 }
 0xc0a   :  { %540 = vrot.lane.b32.xlu1 %v1101_v27, %s1203_s1 }
 0xc0b   :  { %v1103_v29 = vpop.eup %1102 }
 0xc0c   :  { %v535_v30 = vadd.f32 1.0, %v1103_v29 }
 0xc0e   :  { %v536_v31 = vmul.f32 0.5, %v535_v30 }
 0xc10   :  { %v538_v34 = vmul.f32 %v536_v31, %v448_v18 }
 0xc7c   :  { %v541_v32 = vpop.permute.xlu1 %540 }
 0xc7d   :  { %v543_v33 = vmul.f32 %v541_v32, %v536_v31 }
 0xc7f   :  { %545 = vrot.lane.b32.xlu0 %v543_v33, %s1204_s6 }
 0xcf1   :  { %v546_v35 = vpop.permute.xlu0 %545 }
 0xcf2   :  { %v548_v36 = vadd.f32 %v546_v35, %v538_v34 }
 0xcf4   :  { %1104 = vtanh.f32 %v548_v36 }
 0xcfe   :  { %v1105_v37 = vpop.eup %1104 }
 0xcff   :  { %551 = vrot.lane.b32.xlu1 %v1105_v37, %s1203_s1 }
 0xd71   :  { %v552_v38 = vpop.permute.xlu1 %551 }
 0xd72   :  { %v554_v39 = vmul.f32 %v552_v38, %v536_v31 }
 0xd74   :  { %558 = vrot.lane.b32.xlu0 %v554_v39, %s1204_s6 }
 0xde6   :  { %v559_v40 = vpop.permute.xlu0 %558 }
 0xde7   :  { %993 = vmatmul.mubr.msk.f32.vlgmr.msra.gmra.mrb[4].mxu1 %vm44_vm0, %v559_v40 }
 0xde8   :  { %1061 = vmatpush3.bf16.msra.mxu1 %v1256_v5  ;;  %1014 = vmatprep.mubr.msk.f32.mxu1 %vm1201_vm1, %v1202_v1 }
 0xde9   :  { %1062 = vmatprep.subr.bf16.mxu1 %v1200_v0 }
 0xdec   :  { %1064 = vmatpush3.bf16.msra.mxu1 %v1259_v7 }
 0xeba   :  { %v628_v42 = vpop.f32.mrb[4].mxu1 }
 0xebb   :  { %v632_v43 = vadd.f32 %v628_v42, %v556_v41  ;;  %v994_v44 = vpop.f32.mrb[5].mxu1 }
 0xebd   :  { %1106 = vtanh.f32 %v632_v43  ;;  %v633_v46 = vmul.f32 0.5, %v632_v43 }
 0xebf   :  { %1108 = vtanh.f32 %v633_v46 }
 0xec7   :  { %v1107_v45 = vpop.eup %1106 }
 0xec8   :  { %640 = vrot.lane.b32.xlu1 %v1107_v45, %s1203_s1 }
 0xec9   :  { %v1109_v47 = vpop.eup %1108 }
 0xeca   :  { %v635_v48 = vadd.f32 1.0, %v1109_v47 }
 0xecc   :  { %v636_v5 = vmul.f32 0.5, %v635_v48 }
 0xece   :  { %v638_v0 = vmul.f32 %v636_v5, %v548_v36 }
 0xf3a   :  { %v641_v49 = vpop.permute.xlu1 %640 }
 0xf3b   :  { %v643_v50 = vmul.f32 %v641_v49, %v636_v5 }
 0xf3d   :  { %645 = vrot.lane.b32.xlu0 %v643_v50, %s1204_s6 }
 0xfaf   :  { %v646_v1 = vpop.permute.xlu0 %645 }
 0xfb0   :  { %v648_v7 = vadd.f32 %v646_v1, %v638_v0 }
 0xfb2   :  { %1110 = vtanh.f32 %v648_v7 }
 0xfbc   :  { %v1111_v51 = vpop.eup %1110 }
 0xfbd   :  { %651 = vrot.lane.b32.xlu1 %v1111_v51, %s1203_s1 }
0x102f   :  { %v652_v52 = vpop.permute.xlu1 %651 }
0x1030   :  { %v654_v53 = vmul.f32 %v652_v52, %v636_v5 }
0x1032   :  { %658 = vrot.lane.b32.xlu0 %v654_v53, %s1204_s6 }
0x10a4   :  { %v659_v54 = vpop.permute.xlu0 %658 }
0x10a5   :  { %1004 = vmatmul.mubr.msk.f32.vlgmr.msra.gmra.mrb[6].mxu0 %vm44_vm0, %v659_v54 }
0x1178   :  { %v728_v56 = vpop.f32.mrb[6].mxu0 }
0x1179   :  { %v732_v57 = vadd.f32 %v728_v56, %v656_v55  ;;  %v1005_v58 = vpop.f32.mrb[7].mxu0 }
0x117b   :  { %1112 = vtanh.f32 %v732_v57  ;;  %v733_v60 = vmul.f32 0.5, %v732_v57 }
0x117d   :  { %1114 = vtanh.f32 %v733_v60 }
0x1185   :  { %v1113_v59 = vpop.eup %1112 }
0x1186   :  { %740 = vrot.lane.b32.xlu1 %v1113_v59, %s1203_s1 }
0x1187   :  { %v1115_v61 = vpop.eup %1114 }
0x1188   :  { %v735_v62 = vadd.f32 1.0, %v1115_v61 }
0x118a   :  { %v736_v63 = vmul.f32 0.5, %v735_v62 }
0x118c   :  { %v738_v4 = vmul.f32 %v736_v63, %v648_v7 }
0x11f8   :  { %v741_v2 = vpop.permute.xlu1 %740 }
0x11f9   :  { %v743_v3 = vmul.f32 %v741_v2, %v736_v63 }
0x11fb   :  { %745 = vrot.lane.b32.xlu0 %v743_v3, %s1204_s6 }
0x126d   :  { %v746_v6 = vpop.permute.xlu0 %745 }
0x126e   :  { %v748_v8 = vadd.f32 %v746_v6, %v738_v4 }
0x1270   :  { %1116 = vtanh.f32 %v748_v8 }
0x127a   :  { %v1117_v9 = vpop.eup %1116 }
0x127b   :  { %751 = vrot.lane.b32.xlu1 %v1117_v9, %s1203_s1 }
0x12ed   :  { %v752_v10 = vpop.permute.xlu1 %751 }
0x12ee   :  { %v754_v11 = vmul.f32 %v752_v10, %v736_v63 }
0x12f0   :  { %758 = vrot.lane.b32.xlu0 %v754_v11, %s1204_s6 }
0x1362   :  { %v759_v12 = vpop.permute.xlu0 %758 }
0x1363   :  { %1015 = vmatmul.mubr.msk.f32.vlgmr.msra.gmra.mrb[6].mxu1 %vm44_vm0, %v759_v12 }
0x1436   :  { %v828_v14 = vpop.f32.mrb[6].mxu1 }
0x1437   :  { %v832_v15 = vadd.f32 %v828_v14, %v756_v13  ;;  %v1016_v16 = vpop.f32.mrb[7].mxu1 }
0x1439   :  { %1118 = vtanh.f32 %v832_v15  ;;  %v833_v18 = vmul.f32 0.5, %v832_v15 }
0x143b   :  { %1120 = vtanh.f32 %v833_v18 }
0x1443   :  { %v1119_v17 = vpop.eup %1118 }
0x1444   :  { %840 = vrot.lane.b32.xlu1 %v1119_v17, %s1203_s1 }
0x1445   :  { %v1121_v19 = vpop.eup %1120 }
0x1446   :  { %v835_v20 = vadd.f32 1.0, %v1121_v19 }
0x1448   :  { %v836_v21 = vmul.f32 0.5, %v835_v20 }
0x144a   :  { %v838_v24 = vmul.f32 %v836_v21, %v748_v8 }
0x14b6   :  { %v841_v22 = vpop.permute.xlu1 %840 }
0x14b7   :  { %v843_v23 = vmul.f32 %v841_v22, %v836_v21 }
0x14b9   :  { %845 = vrot.lane.b32.xlu0 %v843_v23, %s1204_s6 }
0x152b   :  { %v846_v25 = vpop.permute.xlu0 %845 }
0x152c   :  { %v848_v26 = vadd.f32 %v846_v25, %v838_v24 }
0x152e   :  { %1122 = vtanh.f32 %v848_v26 }
0x1538   :  { %v1123_v27 = vpop.eup %1122 }
0x1539   :  { %851 = vrot.lane.b32.xlu1 %v1123_v27, %s1203_s1 }
0x153d   :  { %861 = vrot.lane.b32.xlu1 %v848_v26, %s1205_s7 }
0x15ab   :  { %v852_v28 = vpop.permute.xlu1 %851 }
0x15ac   :  { %v854_v29 = vmul.f32 %v852_v28, %v836_v21 }
0x15ae   :  { %856 = vrot.lane.b32.xlu0 %v854_v29, %s1204_s6 }
0x15af   :  { %v862_v30 = vpop.permute.xlu1 %861 }
0x15b0   :  { %864 = vst.msk [vmem:[#allocation2] sm:$0xff] %vm44_vm0, %v862_v30 }
0x1620   :  { %v857_v31 = vpop.permute.xlu0 %856 }
0x1621   :  { %859 = vst.msk [vmem:[#allocation8] sm:$0xff] %vm44_vm0, %v857_v31 }
0x1622   :  { %1179 = shalt.err (!%p1176_p6)
}
0x1623   :  { %s1180_s13 = scalar_lea.hbm %s1359_s2, 128 }
0x1624   :  { %p1181_p7 = scmp.ne.s32.totalorder %s1359_s2, %s1180_s13  ;;  %p1184_p8 = scmp.lt.u32.totalorder %s1180_s13, %s1359_s2 }
0x1626   :  { %p1186_p9 = pnand %p1184_p8, %p1181_p7 }
0x1628   :  { %1189 = shalt.err (!%p1186_p9)
}
0x1629   :  { %874 = dma.vmem_to_hbm [thread:$0]  %s872_s9, 128, %s1359_s2, [#allocation5]  }
0x162a   :  { %1194 = dma.done.wait [#allocation5], 128  }
0x162b   :  { %1195 = vsyncadd [#allocation5], 4294967168 }
0x162c   :  { %878 = vsyncpa [#allocation4], 1 }
0x162d   :  { %879 = vsyncpa [#allocation7], 1 }
0x162e   :  { %880 = vsyncpa [#allocation5], 1 }

// kernel: tpu_custom_call.1
= control target key start
LH: loop header
LB: loop body
LE: loop exit
PB: predicated region body
PF: predicated region fallthrough
CT: control target
= control target key end

     0   :  { %7 = vsyncpa [#allocation4], 0  ;;  %s1357_s0 = inlined_call_operand.hbm [shape: f32[8,8,128], index: 0, kind: input, shape index: {}]   ;;  %s1358_s1 = inlined_call_operand.hbm [shape: f32[32,128], index: 1, kind: input, shape index: {}]   ;;  %s1359_s2 = inlined_call_operand.hbm [shape: f32[8,32], index: 2, kind: output, shape index: {}]  }
   0x1   :  { %8 = vsyncpa [#allocation7], 0 }
   0x2   :  { %9 = vsyncpa [#allocation5], 0  ;;  %s1196_s9 = smov [#allocation3]   ;;  %s1124_s13 = scalar_lea.hbm %s1357_s0, 1024 }
   0x3   :  { %s15_s10 = sshll.u32 %s1196_s9, 4  ;;  %p1125_p0 = scmp.ne.s32.totalorder %s1357_s0, %s1124_s13  ;;  %s16_s10 = int_to_ptr.vmem [resolvable:$true] %s15_s10 }
   0x4   :  { %p1128_p1 = scmp.lt.u32.totalorder %s1124_s13, %s1357_s0 }
   0x6   :  { %p1130_p2 = pnand %p1128_p1, %p1125_p0 }
   0x8   :  { %1133 = shalt.err (!%p1130_p2)
}
   0x9   :  { %s1134_s18 = scalar_lea.vmem %s16_s10, 1024  ;;  %p1139_p4 = scmp.lt.s32.totalorder %s16_s10, %s16_s10 }
   0xa   :  { %p1135_p3 = scmp.ne.s32.totalorder %s16_s10, %s1134_s18  ;;  %p1140_p5 = scmp.lt.s32.totalorder %s1134_s18, %s1134_s18 }
   0xc   :  { %p1141_p6 = por %p1140_p5, %p1139_p4 }
   0xe   :  { %p1142_p7 = pnand %p1141_p6, %p1135_p3 }
  0x10   :  { %1145 = shalt.err (!%p1142_p7)
}
  0x11   :  { %s1197_s19 = smov 128   ;;  %s1198_s20 = smov 8  }
  0x12   :  { %21 = dma.hbm_to_vmem [thread:$0]  %s1357_s0, 1024, %s16_s10, [#allocation4], %s1197_s19, %s1197_s19, %s1198_s20  }
  0x13   :  { %s1199_s23 = smov [#allocation6]   ;;  %s1146_s27 = scalar_lea.hbm %s1358_s1, 512 }
  0x14   :  { %s27_s24 = sshll.u32 %s1199_s23, 4  ;;  %p1147_p8 = scmp.ne.s32.totalorder %s1358_s1, %s1146_s27  ;;  %s28_s24 = int_to_ptr.vmem [resolvable:$true] %s27_s24 }
  0x15   :  { %p1150_p9 = scmp.lt.u32.totalorder %s1146_s27, %s1358_s1 }
  0x17   :  { %p1152_p10 = pnand %p1150_p9, %p1147_p8 }
  0x19   :  { %1155 = shalt.err (!%p1152_p10)
}
  0x1a   :  { %s1156_s4 = scalar_lea.vmem %s28_s24, 512  ;;  %p1161_p12 = scmp.lt.s32.totalorder %s28_s24, %s28_s24 }
  0x1b   :  { %p1157_p11 = scmp.ne.s32.totalorder %s28_s24, %s1156_s4  ;;  %p1162_p13 = scmp.lt.s32.totalorder %s1156_s4, %s1156_s4 }
  0x1d   :  { %p1163_p0 = por %p1162_p13, %p1161_p12 }
  0x1f   :  { %p1164_p1 = pnand %p1163_p0, %p1157_p11 }
  0x21   :  { %1167 = shalt.err (!%p1164_p1)
}
  0x22   :  { %33 = dma.hbm_to_vmem [thread:$0]  %s1358_s1, 512, %s28_s24, [#allocation7], %s1197_s19, %s1197_s19, %s1198_s20  }
  0x23   :  { %1190 = dma.done.wait [#allocation4], 1024  }
  0x24   :  { %1191 = vsyncadd [#allocation4], 4294966272 }
  0x25   :  { %1192 = dma.done.wait [#allocation7], 512  }
  0x26   :  { %1193 = vsyncadd [#allocation7], 4294966784  ;;  %vm44_vm0 = vcmask 261120   ;;  %v1200_v0 = vmov 0.0|0.0   ;;  %vm1201_vm1 = vmmov 0   ;;  %v1202_v1 = vmov 0.0  }
  0x27   :  { %1017 = vmatprep.subr.bf16.mxu0 %v1200_v0  ;;  %937 = vmatprep.mubr.msk.f32.mxu0 %vm1201_vm1, %v1202_v1  ;;  %45 = vst.msk [vmem:[#allocation8] sm:$0xff] %vm44_vm0, %v1202_v1  ;;  %46 = vst.msk [vmem:[#allocation2] sm:$0xff] %vm44_vm0, %v1202_v1  ;;  %v47_v2 = vld [vmem:[#allocation6] sm:$0xff]  ;;  %v48_v3 = vld [vmem:[#allocation6 + $0x8] sm:$0xff]  ;;  %s1203_s1 = smov 64   ;;  %s1204_s6 = smov 32  }
  0x28   :  { %1023 = vmatprep.subr.bf16.mxu1 %v1200_v0  ;;  %948 = vmatprep.mubr.msk.f32.mxu1 %vm1201_vm1, %v1202_v1  ;;  %v49_v4 = vld [vmem:[#allocation6 + $0x10] sm:$0xff]  ;;  %v1256_v5 = vpack.c.bf16 %v48_v3, %v47_v2  ;;  %v50_v6 = vld [vmem:[#allocation6 + $0x18] sm:$0xff]  ;;  %v53_v9 = vld [vmem:[#allocation3] sm:$0xff]  ;;  %s1205_s7 = smov 96   ;;  %s1206_s8 = smov [#allocation8]  }
  0x29   :  { %v1259_v7 = vpack.c.bf16 %v50_v6, %v49_v4  ;;  %v156_v29 = vld [vmem:[#allocation3 + $0x8] sm:$0xff]  ;;  %v256_v47 = vld [vmem:[#allocation3 + $0x10] sm:$0xff]  ;;  %v356_v3 = vld [vmem:[#allocation3 + $0x18] sm:$0xff]  ;;  %s871_s9 = sshll.u32 %s1206_s8, 4  ;;  %s872_s9 = int_to_ptr.vmem [resolvable:$true] %s871_s9 }
  0x2a   :  { %1019 = vmatpush3.bf16.msra.mxu0 %v1256_v5  ;;  %1025 = vmatpush3.bf16.msra.mxu1 %v1256_v5  ;;  %s1168_s10 = scalar_lea.vmem %s872_s9, 128  ;;  %p1173_p3 = scmp.lt.s32.totalorder %s872_s9, %s872_s9 }
  0x2b   :  { %1020 = vmatprep.subr.bf16.mxu0 %v1200_v0  ;;  %1026 = vmatprep.subr.bf16.mxu1 %v1200_v0  ;;  %p1169_p2 = scmp.ne.s32.totalorder %s872_s9, %s1168_s10  ;;  %p1174_p4 = scmp.lt.s32.totalorder %s1168_s10, %s1168_s10 }
  0x2d   :  { %p1175_p5 = por %p1174_p4, %p1173_p3 }
  0x2e   :  { %1022 = vmatpush3.bf16.msra.mxu0 %v1259_v7  ;;  %v51_v8 = vld [vmem:[#allocation8] sm:$0xff]  ;;  %1028 = vmatpush3.bf16.msra.mxu1 %v1259_v7  ;;  %v52_v14 = vld [vmem:[#allocation2] sm:$0xff] }
  0x2f   :  { %1029 = vmatprep.subr.bf16.mxu0 %v1200_v0  ;;  %1035 = vmatprep.subr.bf16.mxu1 %v1200_v0  ;;  %p1176_p6 = pnand %p1175_p5, %p1169_p2 }
  0x31   :  { %938 = vmatmul.mubr.msk.f32.vlgmr.msra.gmra.mrb[0].mxu0 %vm44_vm0, %v51_v8 }
  0x32   :  { %1031 = vmatpush3.bf16.msra.mxu0 %v1256_v5  ;;  %959 = vmatprep.mubr.msk.f32.mxu0 %vm1201_vm1, %v1202_v1 }
  0x33   :  { %1032 = vmatprep.subr.bf16.mxu0 %v1200_v0 }
  0x36   :  { %1034 = vmatpush3.bf16.msra.mxu0 %v1259_v7 }
  0x37   :  { %1041 = vmatprep.subr.bf16.mxu0 %v1200_v0 }
 0x104   :  { %v124_v10 = vpop.f32.mrb[0].mxu0 }
 0x105   :  { %v128_v11 = vadd.f32 %v124_v10, %v53_v9  ;;  %v939_v12 = vpop.f32.mrb[1].mxu0 }
 0x107   :  { %1076 = vtanh.f32 %v128_v11  ;;  %v129_v15 = vmul.f32 0.5, %v128_v11 }
 0x109   :  { %1078 = vtanh.f32 %v129_v15 }
 0x111   :  { %v1077_v13 = vpop.eup %1076 }
 0x112   :  { %140 = vrot.lane.b32.xlu0 %v1077_v13, %s1203_s1 }
 0x113   :  { %v1079_v16 = vpop.eup %1078 }
 0x114   :  { %v131_v17 = vadd.f32 1.0, %v1079_v16 }
 0x116   :  { %135 = vrot.lane.b32.xlu0 %v52_v14, %s1204_s6  ;;  %v132_v18 = vmul.f32 0.5, %v131_v17 }
 0x184   :  { %v141_v19 = vpop.permute.xlu0 %140 }
 0x185   :  { %v143_v20 = vmul.f32 %v141_v19, %v132_v18 }
 0x187   :  { %145 = vrot.lane.b32.xlu1 %v143_v20, %s1204_s6 }
 0x188   :  { %v136_v21 = vpop.permute.xlu0 %135 }
 0x189   :  { %v138_v22 = vmul.f32 %v136_v21, %v132_v18 }
 0x1f9   :  { %v146_v23 = vpop.permute.xlu1 %145 }
 0x1fa   :  { %v148_v24 = vadd.f32 %v146_v23, %v138_v22  ;;  %v456_v23 = vld [vmem:[#allocation3 + $0x20] sm:$0xff] }
 0x1fc   :  { %1080 = vtanh.f32 %v148_v24 }
 0x206   :  { %v1081_v25 = vpop.eup %1080 }
 0x207   :  { %151 = vrot.lane.b32.xlu1 %v1081_v25, %s1203_s1 }
 0x279   :  { %v152_v26 = vpop.permute.xlu1 %151 }
 0x27a   :  { %v154_v27 = vmul.f32 %v152_v26, %v132_v18 }
 0x27c   :  { %158 = vrot.lane.b32.xlu0 %v154_v27, %s1204_s6 }
 0x2ee   :  { %v159_v28 = vpop.permute.xlu0 %158 }
 0x2ef   :  { %949 = vmatmul.mubr.msk.f32.vlgmr.msra.gmra.mrb[0].mxu1 %vm44_vm0, %v159_v28 }
 0x2f0   :  { %1037 = vmatpush3.bf16.msra.mxu1 %v1256_v5  ;;  %970 = vmatprep.mubr.msk.f32.mxu1 %vm1201_vm1, %v1202_v1 }
 0x2f1   :  { %1038 = vmatprep.subr.bf16.mxu1 %v1200_v0 }
 0x2f4   :  { %1040 = vmatpush3.bf16.msra.mxu1 %v1259_v7 }
 0x2f5   :  { %1047 = vmatprep.subr.bf16.mxu1 %v1200_v0 }
 0x3c2   :  { %v228_v30 = vpop.f32.mrb[0].mxu1 }
 0x3c3   :  { %v232_v31 = vadd.f32 %v228_v30, %v156_v29  ;;  %v950_v32 = vpop.f32.mrb[1].mxu1 }
 0x3c5   :  { %1082 = vtanh.f32 %v232_v31  ;;  %v233_v34 = vmul.f32 0.5, %v232_v31 }
 0x3c7   :  { %1084 = vtanh.f32 %v233_v34 }
 0x3cf   :  { %v1083_v33 = vpop.eup %1082 }
 0x3d0   :  { %240 = vrot.lane.b32.xlu1 %v1083_v33, %s1203_s1 }
 0x3d1   :  { %v1085_v35 = vpop.eup %1084 }
 0x3d2   :  { %v235_v36 = vadd.f32 1.0, %v1085_v35 }
 0x3d4   :  { %v236_v37 = vmul.f32 0.5, %v235_v36 }
 0x3d6   :  { %v238_v40 = vmul.f32 %v236_v37, %v148_v24 }
 0x442   :  { %v241_v38 = vpop.permute.xlu1 %240 }
 0x443   :  { %v243_v39 = vmul.f32 %v241_v38, %v236_v37 }
 0x445   :  { %245 = vrot.lane.b32.xlu0 %v243_v39, %s1204_s6 }
 0x4b7   :  { %v246_v41 = vpop.permute.xlu0 %245 }
 0x4b8   :  { %v248_v42 = vadd.f32 %v246_v41, %v238_v40  ;;  %v556_v41 = vld [vmem:[#allocation3 + $0x28] sm:$0xff] }
 0x4ba   :  { %1086 = vtanh.f32 %v248_v42 }
 0x4c4   :  { %v1087_v43 = vpop.eup %1086 }
 0x4c5   :  { %251 = vrot.lane.b32.xlu1 %v1087_v43, %s1203_s1 }
 0x537   :  { %v252_v44 = vpop.permute.xlu1 %251 }
 0x538   :  { %v254_v45 = vmul.f32 %v252_v44, %v236_v37 }
 0x53a   :  { %258 = vrot.lane.b32.xlu0 %v254_v45, %s1204_s6 }
 0x5ac   :  { %v259_v46 = vpop.permute.xlu0 %258 }
 0x5ad   :  { %960 = vmatmul.mubr.msk.f32.vlgmr.msra.gmra.mrb[2].mxu0 %vm44_vm0, %v259_v46 }
 0x5ae   :  { %1043 = vmatpush3.bf16.msra.mxu0 %v1256_v5  ;;  %981 = vmatprep.mubr.msk.f32.mxu0 %vm1201_vm1, %v1202_v1 }
 0x5af   :  { %1044 = vmatprep.subr.bf16.mxu0 %v1200_v0 }
 0x5b2   :  { %1046 = vmatpush3.bf16.msra.mxu0 %v1259_v7 }
 0x5b3   :  { %1053 = vmatprep.subr.bf16.mxu0 %v1200_v0 }
 0x680   :  { %v328_v48 = vpop.f32.mrb[2].mxu0 }
 0x681   :  { %v332_v49 = vadd.f32 %v328_v48, %v256_v47  ;;  %v961_v50 = vpop.f32.mrb[3].mxu0 }
 0x683   :  { %1088 = vtanh.f32 %v332_v49  ;;  %v333_v52 = vmul.f32 0.5, %v332_v49 }
 0x685   :  { %1090 = vtanh.f32 %v333_v52 }
 0x68d   :  { %v1089_v51 = vpop.eup %1088 }
 0x68e   :  { %340 = vrot.lane.b32.xlu1 %v1089_v51, %s1203_s1 }
 0x68f   :  { %v1091_v53 = vpop.eup %1090 }
 0x690   :  { %v335_v54 = vadd.f32 1.0, %v1091_v53 }
 0x692   :  { %v336_v55 = vmul.f32 0.5, %v335_v54 }
 0x694   :  { %v338_v58 = vmul.f32 %v336_v55, %v248_v42 }
 0x700   :  { %v341_v56 = vpop.permute.xlu1 %340 }
 0x701   :  { %v343_v57 = vmul.f32 %v341_v56, %v336_v55 }
 0x703   :  { %345 = vrot.lane.b32.xlu0 %v343_v57, %s1204_s6 }
 0x775   :  { %v346_v59 = vpop.permute.xlu0 %345 }
 0x776   :  { %v348_v60 = vadd.f32 %v346_v59, %v338_v58 }
 0x778   :  { %1092 = vtanh.f32 %v348_v60 }
 0x782   :  { %v1093_v61 = vpop.eup %1092 }
 0x783   :  { %351 = vrot.lane.b32.xlu1 %v1093_v61, %s1203_s1 }
 0x7f5   :  { %v352_v62 = vpop.permute.xlu1 %351 }
 0x7f6   :  { %v354_v63 = vmul.f32 %v352_v62, %v336_v55  ;;  %v656_v55 = vld [vmem:[#allocation3 + $0x30] sm:$0xff] }
 0x7f8   :  { %358 = vrot.lane.b32.xlu0 %v354_v63, %s1204_s6 }
 0x86a   :  { %v359_v2 = vpop.permute.xlu0 %358 }
 0x86b   :  { %971 = vmatmul.mubr.msk.f32.vlgmr.msra.gmra.mrb[2].mxu1 %vm44_vm0, %v359_v2 }
 0x86c   :  { %1049 = vmatpush3.bf16.msra.mxu1 %v1256_v5  ;;  %992 = vmatprep.mubr.msk.f32.mxu1 %vm1201_vm1, %v1202_v1 }
 0x86d   :  { %1050 = vmatprep.subr.bf16.mxu1 %v1200_v0 }
 0x870   :  { %1052 = vmatpush3.bf16.msra.mxu1 %v1259_v7 }
 0x871   :  { %1059 = vmatprep.subr.bf16.mxu1 %v1200_v0 }
 0x93e   :  { %v428_v4 = vpop.f32.mrb[2].mxu1 }
 0x93f   :  { %v432_v6 = vadd.f32 %v428_v4, %v356_v3  ;;  %v972_v8 = vpop.f32.mrb[3].mxu1 }
 0x941   :  { %1094 = vtanh.f32 %v432_v6  ;;  %v433_v10 = vmul.f32 0.5, %v432_v6 }
 0x943   :  { %1096 = vtanh.f32 %v433_v10 }
 0x94b   :  { %v1095_v9 = vpop.eup %1094 }
 0x94c   :  { %440 = vrot.lane.b32.xlu1 %v1095_v9, %s1203_s1 }
 0x94d   :  { %v1097_v11 = vpop.eup %1096 }
 0x94e   :  { %v435_v12 = vadd.f32 1.0, %v1097_v11 }
 0x950   :  { %v436_v13 = vmul.f32 0.5, %v435_v12 }
 0x952   :  { %v438_v16 = vmul.f32 %v436_v13, %v348_v60 }
 0x9be   :  { %v441_v14 = vpop.permute.xlu1 %440 }
 0x9bf   :  { %v443_v15 = vmul.f32 %v441_v14, %v436_v13 }
 0x9c1   :  { %445 = vrot.lane.b32.xlu0 %v443_v15, %s1204_s6 }
 0xa33   :  { %v446_v17 = vpop.permute.xlu0 %445 }
 0xa34   :  { %v448_v18 = vadd.f32 %v446_v17, %v438_v16 }
 0xa36   :  { %1098 = vtanh.f32 %v448_v18 }
 0xa40   :  { %v1099_v19 = vpop.eup %1098 }
 0xa41   :  { %451 = vrot.lane.b32.xlu1 %v1099_v19, %s1203_s1 }
 0xab3   :  { %v452_v20 = vpop.permute.xlu1 %451 }
 0xab4   :  { %v454_v21 = vmul.f32 %v452_v20, %v436_v13  ;;  %v756_v13 = vld [vmem:[#allocation3 + $0x38] sm:$0xff] }
 0xab6   :  { %458 = vrot.lane.b32.xlu0 %v454_v21, %s1204_s6 }
 0xb28   :  { %v459_v22 = vpop.permute.xlu0 %458 }
 0xb29   :  { %982 = vmatmul.mubr.msk.f32.vlgmr.msra.gmra.mrb[4].mxu0 %vm44_vm0, %v459_v22 }
 0xb2a   :  { %1055 = vmatpush3.bf16.msra.mxu0 %v1256_v5  ;;  %1003 = vmatprep.mubr.msk.f32.mxu0 %vm1201_vm1, %v1202_v1 }
 0xb2b   :  { %1056 = vmatprep.subr.bf16.mxu0 %v1200_v0 }
 0xb2e   :  { %1058 = vmatpush3.bf16.msra.mxu0 %v1259_v7 }
 0xbfc   :  { %v528_v24 = vpop.f32.mrb[4].mxu0 }
 0xbfd   :  { %v532_v25 = vadd.f32 %v528_v24, %v456_v23  ;;  %v983_v26 = vpop.f32.mrb[5].mxu0 }
 0xbff   :  { %1100 = vtanh.f32 %v532_v25  ;;  %v533_v28 = vmul.f32 0.5, %v532_v25 }
 0xc01   :  { %1102 = vtanh.f32 %v533_v28 }
 0xc09   :  { %v1101_v27 = vpop.eup %1100 }
 0xc0a   :  { %540 = vrot.lane.b32.xlu1 %v1101_v27, %s1203_s1 }
 0xc0b   :  { %v1103_v29 = vpop.eup %1102 }
 0xc0c   :  { %v535_v30 = vadd.f32 1.0, %v1103_v29 }
 0xc0e   :  { %v536_v31 = vmul.f32 0.5, %v535_v30 }
 0xc10   :  { %v538_v34 = vmul.f32 %v536_v31, %v448_v18 }
 0xc7c   :  { %v541_v32 = vpop.permute.xlu1 %540 }
 0xc7d   :  { %v543_v33 = vmul.f32 %v541_v32, %v536_v31 }
 0xc7f   :  { %545 = vrot.lane.b32.xlu0 %v543_v33, %s1204_s6 }
 0xcf1   :  { %v546_v35 = vpop.permute.xlu0 %545 }
 0xcf2   :  { %v548_v36 = vadd.f32 %v546_v35, %v538_v34 }
 0xcf4   :  { %1104 = vtanh.f32 %v548_v36 }
 0xcfe   :  { %v1105_v37 = vpop.eup %1104 }
 0xcff   :  { %551 = vrot.lane.b32.xlu1 %v1105_v37, %s1203_s1 }
 0xd71   :  { %v552_v38 = vpop.permute.xlu1 %551 }
 0xd72   :  { %v554_v39 = vmul.f32 %v552_v38, %v536_v31 }
 0xd74   :  { %558 = vrot.lane.b32.xlu0 %v554_v39, %s1204_s6 }
 0xde6   :  { %v559_v40 = vpop.permute.xlu0 %558 }
 0xde7   :  { %993 = vmatmul.mubr.msk.f32.vlgmr.msra.gmra.mrb[4].mxu1 %vm44_vm0, %v559_v40 }
 0xde8   :  { %1061 = vmatpush3.bf16.msra.mxu1 %v1256_v5  ;;  %1014 = vmatprep.mubr.msk.f32.mxu1 %vm1201_vm1, %v1202_v1 }
 0xde9   :  { %1062 = vmatprep.subr.bf16.mxu1 %v1200_v0 }
 0xdec   :  { %1064 = vmatpush3.bf16.msra.mxu1 %v1259_v7 }
 0xeba   :  { %v628_v42 = vpop.f32.mrb[4].mxu1 }
 0xebb   :  { %v632_v43 = vadd.f32 %v628_v42, %v556_v41  ;;  %v994_v44 = vpop.f32.mrb[5].mxu1 }
 0xebd   :  { %1106 = vtanh.f32 %v632_v43  ;;  %v633_v46 = vmul.f32 0.5, %v632_v43 }
 0xebf   :  { %1108 = vtanh.f32 %v633_v46 }
 0xec7   :  { %v1107_v45 = vpop.eup %1106 }
 0xec8   :  { %640 = vrot.lane.b32.xlu1 %v1107_v45, %s1203_s1 }
 0xec9   :  { %v1109_v47 = vpop.eup %1108 }
 0xeca   :  { %v635_v48 = vadd.f32 1.0, %v1109_v47 }
 0xecc   :  { %v636_v5 = vmul.f32 0.5, %v635_v48 }
 0xece   :  { %v638_v0 = vmul.f32 %v636_v5, %v548_v36 }
 0xf3a   :  { %v641_v49 = vpop.permute.xlu1 %640 }
 0xf3b   :  { %v643_v50 = vmul.f32 %v641_v49, %v636_v5 }
 0xf3d   :  { %645 = vrot.lane.b32.xlu0 %v643_v50, %s1204_s6 }
 0xfaf   :  { %v646_v1 = vpop.permute.xlu0 %645 }
 0xfb0   :  { %v648_v7 = vadd.f32 %v646_v1, %v638_v0 }
 0xfb2   :  { %1110 = vtanh.f32 %v648_v7 }
 0xfbc   :  { %v1111_v51 = vpop.eup %1110 }
 0xfbd   :  { %651 = vrot.lane.b32.xlu1 %v1111_v51, %s1203_s1 }
0x102f   :  { %v652_v52 = vpop.permute.xlu1 %651 }
0x1030   :  { %v654_v53 = vmul.f32 %v652_v52, %v636_v5 }
0x1032   :  { %658 = vrot.lane.b32.xlu0 %v654_v53, %s1204_s6 }
0x10a4   :  { %v659_v54 = vpop.permute.xlu0 %658 }
0x10a5   :  { %1004 = vmatmul.mubr.msk.f32.vlgmr.msra.gmra.mrb[6].mxu0 %vm44_vm0, %v659_v54 }
0x1178   :  { %v728_v56 = vpop.f32.mrb[6].mxu0 }
0x1179   :  { %v732_v57 = vadd.f32 %v728_v56, %v656_v55  ;;  %v1005_v58 = vpop.f32.mrb[7].mxu0 }
0x117b   :  { %1112 = vtanh.f32 %v732_v57  ;;  %v733_v60 = vmul.f32 0.5, %v732_v57 }
0x117d   :  { %1114 = vtanh.f32 %v733_v60 }
0x1185   :  { %v1113_v59 = vpop.eup %1112 }
0x1186   :  { %740 = vrot.lane.b32.xlu1 %v1113_v59, %s1203_s1 }
0x1187   :  { %v1115_v61 = vpop.eup %1114 }
0x1188   :  { %v735_v62 = vadd.f32 1.0, %v1115_v61 }
0x118a   :  { %v736_v63 = vmul.f32 0.5, %v735_v62 }
0x118c   :  { %v738_v4 = vmul.f32 %v736_v63, %v648_v7 }
0x11f8   :  { %v741_v2 = vpop.permute.xlu1 %740 }
0x11f9   :  { %v743_v3 = vmul.f32 %v741_v2, %v736_v63 }
0x11fb   :  { %745 = vrot.lane.b32.xlu0 %v743_v3, %s1204_s6 }
0x126d   :  { %v746_v6 = vpop.permute.xlu0 %745 }
0x126e   :  { %v748_v8 = vadd.f32 %v746_v6, %v738_v4 }
0x1270   :  { %1116 = vtanh.f32 %v748_v8 }
0x127a   :  { %v1117_v9 = vpop.eup %1116 }
0x127b   :  { %751 = vrot.lane.b32.xlu1 %v1117_v9, %s1203_s1 }
0x12ed   :  { %v752_v10 = vpop.permute.xlu1 %751 }
0x12ee   :  { %v754_v11 = vmul.f32 %v752_v10, %v736_v63 }
0x12f0   :  { %758 = vrot.lane.b32.xlu0 %v754_v11, %s1204_s6 }
0x1362   :  { %v759_v12 = vpop.permute.xlu0 %758 }
0x1363   :  { %1015 = vmatmul.mubr.msk.f32.vlgmr.msra.gmra.mrb[6].mxu1 %vm44_vm0, %v759_v12 }
0x1436   :  { %v828_v14 = vpop.f32.mrb[6].mxu1 }
0x1437   :  { %v832_v15 = vadd.f32 %v828_v14, %v756_v13  ;;  %v1016_v16 = vpop.f32.mrb[7].mxu1 }
0x1439   :  { %1118 = vtanh.f32 %v832_v15  ;;  %v833_v18 = vmul.f32 0.5, %v832_v15 }
0x143b   :  { %1120 = vtanh.f32 %v833_v18 }
0x1443   :  { %v1119_v17 = vpop.eup %1118 }
0x1444   :  { %840 = vrot.lane.b32.xlu1 %v1119_v17, %s1203_s1 }
0x1445   :  { %v1121_v19 = vpop.eup %1120 }
0x1446   :  { %v835_v20 = vadd.f32 1.0, %v1121_v19 }
0x1448   :  { %v836_v21 = vmul.f32 0.5, %v835_v20 }
0x144a   :  { %v838_v24 = vmul.f32 %v836_v21, %v748_v8 }
0x14b6   :  { %v841_v22 = vpop.permute.xlu1 %840 }
0x14b7   :  { %v843_v23 = vmul.f32 %v841_v22, %v836_v21 }
0x14b9   :  { %845 = vrot.lane.b32.xlu0 %v843_v23, %s1204_s6 }
0x152b   :  { %v846_v25 = vpop.permute.xlu0 %845 }
0x152c   :  { %v848_v26 = vadd.f32 %v846_v25, %v838_v24 }
0x152e   :  { %1122 = vtanh.f32 %v848_v26 }
0x1538   :  { %v1123_v27 = vpop.eup %1122 }
0x1539   :  { %851 = vrot.lane.b32.xlu1 %v1123_v27, %s1203_s1 }
0x153d   :  { %861 = vrot.lane.b32.xlu1 %v848_v26, %s1205_s7 }
0x15ab   :  { %v852_v28 = vpop.permute.xlu1 %851 }
0x15ac   :  { %v854_v29 = vmul.f32 %v852_v28, %v836_v21 }
0x15ae   :  { %856 = vrot.lane.b32.xlu0 %v854_v29, %s1204_s6 }
0x15af   :  { %v862_v30 = vpop.permute.xlu1 %861 }
0x15b0   :  { %864 = vst.msk [vmem:[#allocation2] sm:$0xff] %vm44_vm0, %v862_v30 }
0x1620   :  { %v857_v31 = vpop.permute.xlu0 %856 }
0x1621   :  { %859 = vst.msk [vmem:[#allocation8] sm:$0xff] %vm44_vm0, %v857_v31 }
0x1622   :  { %1179 = shalt.err (!%p1176_p6)
}
0x1623   :  { %s1180_s13 = scalar_lea.hbm %s1359_s2, 128 }
0x1624   :  { %p1181_p7 = scmp.ne.s32.totalorder %s1359_s2, %s1180_s13  ;;  %p1184_p8 = scmp.lt.u32.totalorder %s1180_s13, %s1359_s2 }
0x1626   :  { %p1186_p9 = pnand %p1184_p8, %p1181_p7 }
0x1628   :  { %1189 = shalt.err (!%p1186_p9)
}
0x1629   :  { %874 = dma.vmem_to_hbm [thread:$0]  %s872_s9, 128, %s1359_s2, [#allocation5]  }
0x162a   :  { %1194 = dma.done.wait [#allocation5], 128  }
0x162b   :  { %1195 = vsyncadd [#allocation5], 4294967168 }
0x162c   :  { %878 = vsyncpa [#allocation4], 1 }
0x162d   :  { %879 = vsyncpa [#allocation7], 1 }
0x162e   :  { %880 = vsyncpa [#allocation5], 1 }

</bundles_post_ra>
